<compile_context>
chip_gen: v6e
topology: v6e:2x2x1
jax: 0.10.0
libtpu: 0.0.40
codegen_flags: <defaults>
</compile_context>

<pallas_src>
import jax
import jax.numpy as jnp
from jax.experimental import pallas as pl
from jax.experimental.pallas import tpu as pltpu


# ------------------------------ fused forward kernel ------------------------------

def _make_fused_kernel(T, H, num_layers):
    """Build the fused kernel for fixed (T, H, num_layers)."""
    H2, H6, H8 = 2 * H, 6 * H, 8 * H

    def kernel(*refs):
        sents_ref = refs[0]                         # (B, T) int32, SMEM (scalar prefetch)
        tproj_ref = refs[1]                         # (V+1, 8H) f32: emb @ Wih0 + b0
        whh0_ref = refs[2]                          # (2H, 8H)  bf16, per-direction blocks
        upper = []
        idx = 3
        for _ in range(num_layers - 1):
            upper.append(refs[idx:idx + 3])         # wih (2H,8H) bf16, b (1,8H) f32, whh bf16
            idx += 3
        wout_ref = refs[idx]                        # (2H, Npad) bf16
        bout_ref = refs[idx + 1]                    # (1,  Npad) f32
        out_ref = refs[idx + 2]                     # (T,  Npad) f32 (batch dim squeezed)
        xs_ref = refs[idx + 3]                      # (T, 2H)   f32 VMEM scratch (layer output)

        b = pl.program_id(0)

        # Lane mask: within every 2H-wide gate block, lanes [0:H] = fwd, [H:2H] = bwd.
        lane = jax.lax.broadcasted_iota(jnp.int32, (1, H8), 1)
        fwd_mask = (lane % H2) < H

        def run_layer(xrows, whh_ref):
            """xrows[p]: (1, 8H) input projection (incl. bias) at sequence position p."""
            whh = whh_ref[...]
            h = jnp.zeros((1, H2), jnp.float32)     # [h_fwd | h_bwd]
            c = jnp.zeros((1, H2), jnp.float32)
            for t in range(T):                      # fully unrolled serial recurrence (T static)
                pre = (jnp.where(fwd_mask, xrows[t], xrows[T - 1 - t])
                       + jnp.dot(h.astype(jnp.bfloat16), whh,
                                 preferred_element_type=jnp.float32))
                sig = jax.nn.sigmoid(pre[:, :H6])   # [i | f | o], both directions, one EUP pass
                g = jnp.tanh(pre[:, H6:])           # g, both directions
                i_g = sig[:, :H2]
                f_g = sig[:, H2:2 * H2]
                o_g = sig[:, 2 * H2:H6]
                c = f_g * c + i_g * g
                h = o_g * jnp.tanh(c)
                xs_ref[t:t + 1, :H] = h[:, :H]              # fwd hidden of position t
                xs_ref[T - 1 - t:T - t, H:] = h[:, H:]      # bwd hidden of position T-1-t

        # ---- layer 0: gather precomputed input projections for this sentence ----
        xrows0 = [tproj_ref[pl.ds(sents_ref[b, t], 1), :] for t in range(T)]
        run_layer(xrows0, whh0_ref)

        # ---- layers 1..L-1: hoisted input projection, then recurrence ----
        for wih_ref, b_ref, whh_ref in upper:
            x = xs_ref[...]                                  # (T, 2H) previous-layer output
            xproj = (jnp.dot(x.astype(jnp.bfloat16), wih_ref[...],
                             preferred_element_type=jnp.float32) + b_ref[...])
            run_layer([xproj[t:t + 1, :] for t in range(T)], whh_ref)

        # ---- hidden2tag (padded to 128 lanes -> single dense (T, 128) store) ----
        x = xs_ref[...]
        out_ref[...] = (jnp.dot(x.astype(jnp.bfloat16), wout_ref[...],
                                preferred_element_type=jnp.float32) + bout_ref[...])

    return kernel


# ------------------------------ parameter construction ----------------------------

def init_params(key, numWords, numTags, embSize, rnnSize, hiddenSize):
    H = hiddenSize
    n_layers = rnnSize
    keys = jax.random.split(key, n_layers + 2)
    params = {"hiddenSize": H, "numTags": numTags, "numLayers": n_layers}

    # nn.Embedding default init: N(0, 1)
    emb = jax.random.normal(keys[0], (numWords + 1, embSize), jnp.float32)
    params["embedding"] = emb

    # Packed gate order [i, f, o, g]; PyTorch row order is [i, f, g, o] (each H rows).
    gate_rows = [slice(0, H), slice(H, 2 * H), slice(3 * H, 4 * H), slice(2 * H, 3 * H)]
    bound = 1.0 / (H ** 0.5)   # nn.LSTM default: U(-1/sqrt(H), 1/sqrt(H))

    def pack_layer(k_layer, in_size):
        dirs = []
        for d in range(2):
            k1, k2, k3, k4 = jax.random.split(jax.random.fold_in(k_layer, d), 4)
            wih = jax.random.uniform(k1, (4 * H, in_size), jnp.float32, -bound, bound)
            whh = jax.random.uniform(k2, (4 * H, H), jnp.float32, -bound, bound)
            bih = jax.random.uniform(k3, (4 * H,), jnp.float32, -bound, bound)
            bhh = jax.random.uniform(k4, (4 * H,), jnp.float32, -bound, bound)
            dirs.append((wih, whh, bih + bhh))
        (wih_f, whh_f, b_f), (wih_b, whh_b, b_b) = dirs

        # Direction-interleaved columns: [i_f i_b | f_f f_b | o_f o_b | g_f g_b]
        wih_p = jnp.zeros((in_size, 8 * H), jnp.float32)
        whh_p = jnp.zeros((2 * H, 8 * H), jnp.float32)
        b_p = jnp.zeros((1, 8 * H), jnp.float32)
        for g, rs in enumerate(gate_rows):
            c0 = 2 * g * H
            wih_p = wih_p.at[:, c0:c0 + H].set(wih_f[rs].T)
            wih_p = wih_p.at[:, c0 + H:c0 + 2 * H].set(wih_b[rs].T)
            whh_p = whh_p.at[:H, c0:c0 + H].set(whh_f[rs].T)
            whh_p = whh_p.at[H:, c0 + H:c0 + 2 * H].set(whh_b[rs].T)
            b_p = b_p.at[0, c0:c0 + H].set(b_f[rs])
            b_p = b_p.at[0, c0 + H:c0 + 2 * H].set(b_b[rs])
        return wih_p, whh_p, b_p

    layers = []
    for l in range(n_layers):
        in_size = embSize if l == 0 else 2 * H
        wih_p, whh_p, b_p = pack_layer(keys[1 + l], in_size)
        if l == 0:
            # Fold the embedding into layer-0's input projection (one-time f32 precompute).
            params["table_proj"] = jnp.dot(emb, wih_p) + b_p        # (V+1, 8H) f32
            layers.append({"whh_p": whh_p.astype(jnp.bfloat16)})
        else:
            layers.append({"wih_p": wih_p.astype(jnp.bfloat16),
                           "b_p": b_p,
                           "whh_p": whh_p.astype(jnp.bfloat16)})
    params["lstm"] = layers

    # nn.Linear default: U(-1/sqrt(fan_in), 1/sqrt(fan_in)), fan_in = 2H
    k1, k2 = jax.random.split(keys[n_layers + 1], 2)
    bound_l = 1.0 / ((2 * H) ** 0.5)
    w = jax.random.uniform(k1, (numTags, 2 * H), jnp.float32, -bound_l, bound_l)
    bias = jax.random.uniform(k2, (numTags,), jnp.float32, -bound_l, bound_l)
    n_pad = ((numTags + 127) // 128) * 128
    params["hidden2tag"] = {
        "w_pad": jnp.zeros((2 * H, n_pad), jnp.float32).at[:, :numTags].set(w.T)
                    .astype(jnp.bfloat16),
        "b_pad": jnp.zeros((1, n_pad), jnp.float32).at[:, :numTags].set(bias),
        "n_pad": n_pad,
    }
    return params


# ------------------------------------ forward --------------------------------------

def tagger_forward_batch(params, sentences):
    """sentences: (B, T) int32 word ids -> (B, T, numTags) f32 tag scores."""
    B, T = sentences.shape
    H = params["hiddenSize"]
    num_layers = params["numLayers"]
    num_tags = params["numTags"]
    n_pad = params["hidden2tag"]["n_pad"]

    kernel = _make_fused_kernel(T, H, num_layers)

    def resident(arr):
        # Whole array resident in VMEM; constant block index -> no re-fetch across grid steps.
        nd = arr.ndim
        return pl.BlockSpec(arr.shape, lambda b, sents, _nd=nd: (0,) * _nd)

    in_arrays = [params["table_proj"], params["lstm"][0]["whh_p"]]
    for lyr in params["lstm"][1:]:
        in_arrays += [lyr["wih_p"], lyr["b_p"], lyr["whh_p"]]
    in_arrays += [params["hidden2tag"]["w_pad"], params["hidden2tag"]["b_pad"]]

    grid_spec = pltpu.PrefetchScalarGridSpec(
        num_scalar_prefetch=1,                                    # sentence ids -> SMEM
        grid=(B,),
        in_specs=[resident(a) for a in in_arrays],
        out_specs=pl.BlockSpec((None, T, n_pad), lambda b, sents: (b, 0, 0)),
        scratch_shapes=[pltpu.VMEM((T, 2 * H), jnp.float32)],
    )
    out_pad = pl.pallas_call(
        kernel,
        out_shape=jax.ShapeDtypeStruct((B, T, n_pad), jnp.float32),
        grid_spec=grid_spec,
        compiler_params=pltpu.CompilerParams(dimension_semantics=("parallel",)),
    )(sentences.astype(jnp.int32), *in_arrays)
    return out_pad[:, :, :num_tags]


def tagger_forward(params, sentence):
    """Single sentence (T,) -> (T, numTags); matches TaggerModel.forward semantics."""
    return tagger_forward_batch(params, sentence[None, :])[0]


if __name__ == "__main__":
    numWords, numTags = 50, 10
    embSize, rnnSize, hiddenSize, dropoutRate = 16, 2, 32, 0.5
    seqLen, batch = 8, 4

    key = jax.random.PRNGKey(0)
    pkey, skey = jax.random.split(key)
    params = init_params(pkey, numWords, numTags, embSize, rnnSize, hiddenSize)
    sentences = jax.random.randint(skey, (batch, seqLen), 0, numWords + 1, dtype=jnp.int32)

    # TODO(synk): nn.Dropout is implemented as the eval-mode identity (no train-mode RNG dropout).
    tag_batch = jax.block_until_ready(tagger_forward_batch(params, sentences))
    tag_single = jax.block_until_ready(tagger_forward(params, sentences[0]))

    assert tag_batch.shape == (batch, seqLen, numTags) and tag_batch.dtype == jnp.float32
    assert tag_single.shape == (seqLen, numTags)
    assert bool(jnp.all(jnp.isfinite(tag_batch)))
    print("KERNEL_OK")
</pallas_src>

<mosaic_0001>
module attributes {stable_mosaic.version = 11 : i64} {
  func.func @kernel(%arg0: i32, %arg1: memref<4x8xi32, #tpu.memory_space<smem>>, %arg2: memref<51x256xf32, #tpu.memory_space<vmem>>, %arg3: memref<64x256xbf16, #tpu.memory_space<vmem>>, %arg4: memref<64x256xbf16, #tpu.memory_space<vmem>>, %arg5: memref<1x256xf32, #tpu.memory_space<vmem>>, %arg6: memref<64x256xbf16, #tpu.memory_space<vmem>>, %arg7: memref<64x128xbf16, #tpu.memory_space<vmem>>, %arg8: memref<1x128xf32, #tpu.memory_space<vmem>>, %arg9: memref<1x8x128xf32, #tpu.memory_space<vmem>>, %arg10: memref<8x64xf32, #tpu.memory_space<vmem>>) attributes {dimension_semantics = [#tpu.dimension_semantics<parallel>], iteration_bounds = array<i64: 4>, scalar_prefetch = 1 : i64, scratch_operands = 1 : i64, tpu.core_type = #tpu.core_type<tc>, window_params = [{pipeline_mode = #tpu.pipeline_mode<synchronous>, transform_indices = @transform_0, window_bounds = array<i64: 51, 256>}, {pipeline_mode = #tpu.pipeline_mode<synchronous>, transform_indices = @transform_1, window_bounds = array<i64: 64, 256>}, {pipeline_mode = #tpu.pipeline_mode<synchronous>, transform_indices = @transform_2, window_bounds = array<i64: 64, 256>}, {pipeline_mode = #tpu.pipeline_mode<synchronous>, transform_indices = @transform_3, window_bounds = array<i64: 1, 256>}, {pipeline_mode = #tpu.pipeline_mode<synchronous>, transform_indices = @transform_4, window_bounds = array<i64: 64, 256>}, {pipeline_mode = #tpu.pipeline_mode<synchronous>, transform_indices = @transform_5, window_bounds = array<i64: 64, 128>}, {pipeline_mode = #tpu.pipeline_mode<synchronous>, transform_indices = @transform_6, window_bounds = array<i64: 1, 128>}, {transform_indices = @transform_7, window_bounds = array<i64: 1, 8, 128>}]} {
    %0 = tpu.iota {dimensions = array<i32: 1>} : vector<1x256xi32>
    %c64_i32 = arith.constant 64 : i32
    %c0_i32 = arith.constant 0 : i32
    %1 = arith.cmpi eq, %c64_i32, %c0_i32 : i32
    %c1_i32 = arith.constant 1 : i32
    %2 = arith.select %1, %c1_i32, %c64_i32 : i32
    %3 = vector.broadcast %2 : i32 to vector<1x256xi32>
    %4 = arith.remsi %0, %3 : vector<1x256xi32>
    %c0_i32_0 = arith.constant 0 : i32
    %5 = vector.broadcast %c0_i32_0 : i32 to vector<1x256xi32>
    %6 = arith.cmpi ne, %4, %5 : vector<1x256xi32>
    %c0_i32_1 = arith.constant 0 : i32
    %7 = vector.broadcast %c0_i32_1 : i32 to vector<1x256xi32>
    %8 = arith.cmpi slt, %4, %7 : vector<1x256xi32>
    %c0_i32_2 = arith.constant 0 : i32
    %9 = arith.cmpi slt, %2, %c0_i32_2 : i32
    %10 = vector.broadcast %9 : i1 to vector<1x256xi1>
    %11 = vector.broadcast %10 : vector<1x256xi1> to vector<1x256xi1>
    %12 = arith.xori %8, %11 : vector<1x256xi1>
    %13 = arith.andi %12, %6 : vector<1x256xi1>
    %14 = vector.broadcast %2 : i32 to vector<1x256xi32>
    %15 = arith.addi %4, %14 : vector<1x256xi32>
    %16 = arith.select %13, %15, %4 : vector<1x256xi1>, vector<1x256xi32>
    %c32_i32 = arith.constant 32 : i32
    %17 = vector.broadcast %c32_i32 : i32 to vector<1x256xi32>
    %18 = arith.cmpi slt, %16, %17 : vector<1x256xi32>
    %19 = arith.index_cast %arg0 : i32 to index
    %c0 = arith.constant 0 : index
    %20 = memref.load %arg1[%19, %c0] : memref<4x8xi32, #tpu.memory_space<smem>>
    %21 = arith.index_cast %20 : i32 to index
    %c0_3 = arith.constant 0 : index
    %22 = vector.load %arg2[%21, %c0_3] : memref<51x256xf32, #tpu.memory_space<vmem>>, vector<1x256xf32>
    %23 = arith.index_cast %arg0 : i32 to index
    %c1 = arith.constant 1 : index
    %24 = memref.load %arg1[%23, %c1] : memref<4x8xi32, #tpu.memory_space<smem>>
    %25 = arith.index_cast %24 : i32 to index
    %c0_4 = arith.constant 0 : index
    %26 = vector.load %arg2[%25, %c0_4] : memref<51x256xf32, #tpu.memory_space<vmem>>, vector<1x256xf32>
    %27 = arith.index_cast %arg0 : i32 to index
    %c2 = arith.constant 2 : index
    %28 = memref.load %arg1[%27, %c2] : memref<4x8xi32, #tpu.memory_space<smem>>
    %29 = arith.index_cast %28 : i32 to index
    %c0_5 = arith.constant 0 : index
    %30 = vector.load %arg2[%29, %c0_5] : memref<51x256xf32, #tpu.memory_space<vmem>>, vector<1x256xf32>
    %31 = arith.index_cast %arg0 : i32 to index
    %c3 = arith.constant 3 : index
    %32 = memref.load %arg1[%31, %c3] : memref<4x8xi32, #tpu.memory_space<smem>>
    %33 = arith.index_cast %32 : i32 to index
    %c0_6 = arith.constant 0 : index
    %34 = vector.load %arg2[%33, %c0_6] : memref<51x256xf32, #tpu.memory_space<vmem>>, vector<1x256xf32>
    %35 = arith.index_cast %arg0 : i32 to index
    %c4 = arith.constant 4 : index
    %36 = memref.load %arg1[%35, %c4] : memref<4x8xi32, #tpu.memory_space<smem>>
    %37 = arith.index_cast %36 : i32 to index
    %c0_7 = arith.constant 0 : index
    %38 = vector.load %arg2[%37, %c0_7] : memref<51x256xf32, #tpu.memory_space<vmem>>, vector<1x256xf32>
    %39 = arith.index_cast %arg0 : i32 to index
    %c5 = arith.constant 5 : index
    %40 = memref.load %arg1[%39, %c5] : memref<4x8xi32, #tpu.memory_space<smem>>
    %41 = arith.index_cast %40 : i32 to index
    %c0_8 = arith.constant 0 : index
    %42 = vector.load %arg2[%41, %c0_8] : memref<51x256xf32, #tpu.memory_space<vmem>>, vector<1x256xf32>
    %43 = arith.index_cast %arg0 : i32 to index
    %c6 = arith.constant 6 : index
    %44 = memref.load %arg1[%43, %c6] : memref<4x8xi32, #tpu.memory_space<smem>>
    %45 = arith.index_cast %44 : i32 to index
    %c0_9 = arith.constant 0 : index
    %46 = vector.load %arg2[%45, %c0_9] : memref<51x256xf32, #tpu.memory_space<vmem>>, vector<1x256xf32>
    %47 = arith.index_cast %arg0 : i32 to index
    %c7 = arith.constant 7 : index
    %48 = memref.load %arg1[%47, %c7] : memref<4x8xi32, #tpu.memory_space<smem>>
    %49 = arith.index_cast %48 : i32 to index
    %c0_10 = arith.constant 0 : index
    %50 = vector.load %arg2[%49, %c0_10] : memref<51x256xf32, #tpu.memory_space<vmem>>, vector<1x256xf32>
    %c0_11 = arith.constant 0 : index
    %c0_12 = arith.constant 0 : index
    %51 = vector.load %arg3[%c0_11, %c0_12] : memref<64x256xbf16, #tpu.memory_space<vmem>>, vector<64x256xbf16>
    %cst = arith.constant 0.000000e+00 : f32
    %52 = vector.broadcast %cst : f32 to vector<1x64xf32>
    %cst_13 = arith.constant 0.000000e+00 : f32
    %53 = vector.broadcast %cst_13 : f32 to vector<1x64xf32>
    %54 = arith.select %18, %22, %50 : vector<1x256xi1>, vector<1x256xf32>
    %55 = arith.truncf %52 : vector<1x64xf32> to vector<1x64xbf16>
    %cst_14 = arith.constant dense<0.000000e+00> : vector<1x256xf32>
    %56 = tpu.matmul %55, %51, %cst_14 {dimension_numbers = #tpu.dot_dimension_numbers<[1], [0], [0], [1], [0, 0, 1, 1], [], []>} : vector<1x64xbf16>, vector<64x256xbf16>, vector<1x256xf32> -> vector<1x256xf32>
    %57 = arith.addf %54, %56 : vector<1x256xf32>
    %58 = vector.extract_strided_slice %57 {offsets = [0, 0], sizes = [1, 192], strides = [1, 1]} : vector<1x256xf32> to vector<1x192xf32>
    %59 = arith.negf %58 : vector<1x192xf32>
    %60 = math.exp %59 : vector<1x192xf32>
    %cst_15 = arith.constant 1.000000e+00 : f32
    %61 = vector.broadcast %cst_15 : f32 to vector<1x192xf32>
    %62 = arith.addf %61, %60 : vector<1x192xf32>
    %63 = arith.divf %61, %62 : vector<1x192xf32>
    %64 = vector.extract_strided_slice %57 {offsets = [0, 192], sizes = [1, 64], strides = [1, 1]} : vector<1x256xf32> to vector<1x64xf32>
    %65 = math.tanh %64 : vector<1x64xf32>
    %66 = vector.extract_strided_slice %63 {offsets = [0, 0], sizes = [1, 64], strides = [1, 1]} : vector<1x192xf32> to vector<1x64xf32>
    %67 = vector.extract_strided_slice %63 {offsets = [0, 64], sizes = [1, 64], strides = [1, 1]} : vector<1x192xf32> to vector<1x64xf32>
    %68 = vector.extract_strided_slice %63 {offsets = [0, 128], sizes = [1, 64], strides = [1, 1]} : vector<1x192xf32> to vector<1x64xf32>
    %69 = arith.mulf %67, %53 : vector<1x64xf32>
    %70 = arith.mulf %66, %65 : vector<1x64xf32>
    %71 = arith.addf %69, %70 : vector<1x64xf32>
    %72 = math.tanh %71 : vector<1x64xf32>
    %73 = arith.mulf %68, %72 : vector<1x64xf32>
    %74 = vector.extract_strided_slice %73 {offsets = [0, 0], sizes = [1, 32], strides = [1, 1]} : vector<1x64xf32> to vector<1x32xf32>
    %c0_16 = arith.constant 0 : index
    %c0_17 = arith.constant 0 : index
    %75 = vector.load %arg10[%c0_16, %c0_17] : memref<8x64xf32, #tpu.memory_space<vmem>>, vector<1x32xf32>
    tpu.vector_store %arg10[%c0_16, %c0_17], %74 {strides = array<i32>} : memref<8x64xf32, #tpu.memory_space<vmem>>, vector<1x32xf32>,
    %76 = vector.extract_strided_slice %73 {offsets = [0, 32], sizes = [1, 32], strides = [1, 1]} : vector<1x64xf32> to vector<1x32xf32>
    %c7_18 = arith.constant 7 : index
    %c32 = arith.constant 32 : index
    %77 = vector.load %arg10[%c7_18, %c32] : memref<8x64xf32, #tpu.memory_space<vmem>>, vector<1x32xf32>
    tpu.vector_store %arg10[%c7_18, %c32], %76 {strides = array<i32>} : memref<8x64xf32, #tpu.memory_space<vmem>>, vector<1x32xf32>,
    %78 = arith.select %18, %26, %46 : vector<1x256xi1>, vector<1x256xf32>
    %79 = arith.truncf %73 : vector<1x64xf32> to vector<1x64xbf16>
    %cst_19 = arith.constant dense<0.000000e+00> : vector<1x256xf32>
    %80 = tpu.matmul %79, %51, %cst_19 {dimension_numbers = #tpu.dot_dimension_numbers<[1], [0], [0], [1], [0, 0, 1, 1], [], []>} : vector<1x64xbf16>, vector<64x256xbf16>, vector<1x256xf32> -> vector<1x256xf32>
    %81 = arith.addf %78, %80 : vector<1x256xf32>
    %82 = vector.extract_strided_slice %81 {offsets = [0, 0], sizes = [1, 192], strides = [1, 1]} : vector<1x256xf32> to vector<1x192xf32>
    %83 = arith.negf %82 : vector<1x192xf32>
    %84 = math.exp %83 : vector<1x192xf32>
    %cst_20 = arith.constant 1.000000e+00 : f32
    %85 = vector.broadcast %cst_20 : f32 to vector<1x192xf32>
    %86 = arith.addf %85, %84 : vector<1x192xf32>
    %87 = arith.divf %85, %86 : vector<1x192xf32>
    %88 = vector.extract_strided_slice %81 {offsets = [0, 192], sizes = [1, 64], strides = [1, 1]} : vector<1x256xf32> to vector<1x64xf32>
    %89 = math.tanh %88 : vector<1x64xf32>
    %90 = vector.extract_strided_slice %87 {offsets = [0, 0], sizes = [1, 64], strides = [1, 1]} : vector<1x192xf32> to vector<1x64xf32>
    %91 = vector.extract_strided_slice %87 {offsets = [0, 64], sizes = [1, 64], strides = [1, 1]} : vector<1x192xf32> to vector<1x64xf32>
    %92 = vector.extract_strided_slice %87 {offsets = [0, 128], sizes = [1, 64], strides = [1, 1]} : vector<1x192xf32> to vector<1x64xf32>
    %93 = arith.mulf %91, %71 : vector<1x64xf32>
    %94 = arith.mulf %90, %89 : vector<1x64xf32>
    %95 = arith.addf %93, %94 : vector<1x64xf32>
    %96 = math.tanh %95 : vector<1x64xf32>
    %97 = arith.mulf %92, %96 : vector<1x64xf32>
    %98 = vector.extract_strided_slice %97 {offsets = [0, 0], sizes = [1, 32], strides = [1, 1]} : vector<1x64xf32> to vector<1x32xf32>
    %c1_21 = arith.constant 1 : index
    %c0_22 = arith.constant 0 : index
    %99 = vector.load %arg10[%c1_21, %c0_22] : memref<8x64xf32, #tpu.memory_space<vmem>>, vector<1x32xf32>
    tpu.vector_store %arg10[%c1_21, %c0_22], %98 {strides = array<i32>} : memref<8x64xf32, #tpu.memory_space<vmem>>, vector<1x32xf32>,
    %100 = vector.extract_strided_slice %97 {offsets = [0, 32], sizes = [1, 32], strides = [1, 1]} : vector<1x64xf32> to vector<1x32xf32>
    %c6_23 = arith.constant 6 : index
    %c32_24 = arith.constant 32 : index
    %101 = vector.load %arg10[%c6_23, %c32_24] : memref<8x64xf32, #tpu.memory_space<vmem>>, vector<1x32xf32>
    tpu.vector_store %arg10[%c6_23, %c32_24], %100 {strides = array<i32>} : memref<8x64xf32, #tpu.memory_space<vmem>>, vector<1x32xf32>,
    %102 = arith.select %18, %30, %42 : vector<1x256xi1>, vector<1x256xf32>
    %103 = arith.truncf %97 : vector<1x64xf32> to vector<1x64xbf16>
    %cst_25 = arith.constant dense<0.000000e+00> : vector<1x256xf32>
    %104 = tpu.matmul %103, %51, %cst_25 {dimension_numbers = #tpu.dot_dimension_numbers<[1], [0], [0], [1], [0, 0, 1, 1], [], []>} : vector<1x64xbf16>, vector<64x256xbf16>, vector<1x256xf32> -> vector<1x256xf32>
    %105 = arith.addf %102, %104 : vector<1x256xf32>
    %106 = vector.extract_strided_slice %105 {offsets = [0, 0], sizes = [1, 192], strides = [1, 1]} : vector<1x256xf32> to vector<1x192xf32>
    %107 = arith.negf %106 : vector<1x192xf32>
    %108 = math.exp %107 : vector<1x192xf32>
    %cst_26 = arith.constant 1.000000e+00 : f32
    %109 = vector.broadcast %cst_26 : f32 to vector<1x192xf32>
    %110 = arith.addf %109, %108 : vector<1x192xf32>
    %111 = arith.divf %109, %110 : vector<1x192xf32>
    %112 = vector.extract_strided_slice %105 {offsets = [0, 192], sizes = [1, 64], strides = [1, 1]} : vector<1x256xf32> to vector<1x64xf32>
    %113 = math.tanh %112 : vector<1x64xf32>
    %114 = vector.extract_strided_slice %111 {offsets = [0, 0], sizes = [1, 64], strides = [1, 1]} : vector<1x192xf32> to vector<1x64xf32>
    %115 = vector.extract_strided_slice %111 {offsets = [0, 64], sizes = [1, 64], strides = [1, 1]} : vector<1x192xf32> to vector<1x64xf32>
    %116 = vector.extract_strided_slice %111 {offsets = [0, 128], sizes = [1, 64], strides = [1, 1]} : vector<1x192xf32> to vector<1x64xf32>
    %117 = arith.mulf %115, %95 : vector<1x64xf32>
    %118 = arith.mulf %114, %113 : vector<1x64xf32>
    %119 = arith.addf %117, %118 : vector<1x64xf32>
    %120 = math.tanh %119 : vector<1x64xf32>
    %121 = arith.mulf %116, %120 : vector<1x64xf32>
    %122 = vector.extract_strided_slice %121 {offsets = [0, 0], sizes = [1, 32], strides = [1, 1]} : vector<1x64xf32> to vector<1x32xf32>
    %c2_27 = arith.constant 2 : index
    %c0_28 = arith.constant 0 : index
    %123 = vector.load %arg10[%c2_27, %c0_28] : memref<8x64xf32, #tpu.memory_space<vmem>>, vector<1x32xf32>
    tpu.vector_store %arg10[%c2_27, %c0_28], %122 {strides = array<i32>} : memref<8x64xf32, #tpu.memory_space<vmem>>, vector<1x32xf32>,
    %124 = vector.extract_strided_slice %121 {offsets = [0, 32], sizes = [1, 32], strides = [1, 1]} : vector<1x64xf32> to vector<1x32xf32>
    %c5_29 = arith.constant 5 : index
    %c32_30 = arith.constant 32 : index
    %125 = vector.load %arg10[%c5_29, %c32_30] : memref<8x64xf32, #tpu.memory_space<vmem>>, vector<1x32xf32>
    tpu.vector_store %arg10[%c5_29, %c32_30], %124 {strides = array<i32>} : memref<8x64xf32, #tpu.memory_space<vmem>>, vector<1x32xf32>,
    %126 = arith.select %18, %34, %38 : vector<1x256xi1>, vector<1x256xf32>
    %127 = arith.truncf %121 : vector<1x64xf32> to vector<1x64xbf16>
    %cst_31 = arith.constant dense<0.000000e+00> : vector<1x256xf32>
    %128 = tpu.matmul %127, %51, %cst_31 {dimension_numbers = #tpu.dot_dimension_numbers<[1], [0], [0], [1], [0, 0, 1, 1], [], []>} : vector<1x64xbf16>, vector<64x256xbf16>, vector<1x256xf32> -> vector<1x256xf32>
    %129 = arith.addf %126, %128 : vector<1x256xf32>
    %130 = vector.extract_strided_slice %129 {offsets = [0, 0], sizes = [1, 192], strides = [1, 1]} : vector<1x256xf32> to vector<1x192xf32>
    %131 = arith.negf %130 : vector<1x192xf32>
    %132 = math.exp %131 : vector<1x192xf32>
    %cst_32 = arith.constant 1.000000e+00 : f32
    %133 = vector.broadcast %cst_32 : f32 to vector<1x192xf32>
    %134 = arith.addf %133, %132 : vector<1x192xf32>
    %135 = arith.divf %133, %134 : vector<1x192xf32>
    %136 = vector.extract_strided_slice %129 {offsets = [0, 192], sizes = [1, 64], strides = [1, 1]} : vector<1x256xf32> to vector<1x64xf32>
    %137 = math.tanh %136 : vector<1x64xf32>
    %138 = vector.extract_strided_slice %135 {offsets = [0, 0], sizes = [1, 64], strides = [1, 1]} : vector<1x192xf32> to vector<1x64xf32>
    %139 = vector.extract_strided_slice %135 {offsets = [0, 64], sizes = [1, 64], strides = [1, 1]} : vector<1x192xf32> to vector<1x64xf32>
    %140 = vector.extract_strided_slice %135 {offsets = [0, 128], sizes = [1, 64], strides = [1, 1]} : vector<1x192xf32> to vector<1x64xf32>
    %141 = arith.mulf %139, %119 : vector<1x64xf32>
    %142 = arith.mulf %138, %137 : vector<1x64xf32>
    %143 = arith.addf %141, %142 : vector<1x64xf32>
    %144 = math.tanh %143 : vector<1x64xf32>
    %145 = arith.mulf %140, %144 : vector<1x64xf32>
    %146 = vector.extract_strided_slice %145 {offsets = [0, 0], sizes = [1, 32], strides = [1, 1]} : vector<1x64xf32> to vector<1x32xf32>
    %c3_33 = arith.constant 3 : index
    %c0_34 = arith.constant 0 : index
    %147 = vector.load %arg10[%c3_33, %c0_34] : memref<8x64xf32, #tpu.memory_space<vmem>>, vector<1x32xf32>
    tpu.vector_store %arg10[%c3_33, %c0_34], %146 {strides = array<i32>} : memref<8x64xf32, #tpu.memory_space<vmem>>, vector<1x32xf32>,
    %148 = vector.extract_strided_slice %145 {offsets = [0, 32], sizes = [1, 32], strides = [1, 1]} : vector<1x64xf32> to vector<1x32xf32>
    %c4_35 = arith.constant 4 : index
    %c32_36 = arith.constant 32 : index
    %149 = vector.load %arg10[%c4_35, %c32_36] : memref<8x64xf32, #tpu.memory_space<vmem>>, vector<1x32xf32>
    tpu.vector_store %arg10[%c4_35, %c32_36], %148 {strides = array<i32>} : memref<8x64xf32, #tpu.memory_space<vmem>>, vector<1x32xf32>,
    %150 = arith.select %18, %38, %34 : vector<1x256xi1>, vector<1x256xf32>
    %151 = arith.truncf %145 : vector<1x64xf32> to vector<1x64xbf16>
    %cst_37 = arith.constant dense<0.000000e+00> : vector<1x256xf32>
    %152 = tpu.matmul %151, %51, %cst_37 {dimension_numbers = #tpu.dot_dimension_numbers<[1], [0], [0], [1], [0, 0, 1, 1], [], []>} : vector<1x64xbf16>, vector<64x256xbf16>, vector<1x256xf32> -> vector<1x256xf32>
    %153 = arith.addf %150, %152 : vector<1x256xf32>
    %154 = vector.extract_strided_slice %153 {offsets = [0, 0], sizes = [1, 192], strides = [1, 1]} : vector<1x256xf32> to vector<1x192xf32>
    %155 = arith.negf %154 : vector<1x192xf32>
    %156 = math.exp %155 : vector<1x192xf32>
    %cst_38 = arith.constant 1.000000e+00 : f32
    %157 = vector.broadcast %cst_38 : f32 to vector<1x192xf32>
    %158 = arith.addf %157, %156 : vector<1x192xf32>
    %159 = arith.divf %157, %158 : vector<1x192xf32>
    %160 = vector.extract_strided_slice %153 {offsets = [0, 192], sizes = [1, 64], strides = [1, 1]} : vector<1x256xf32> to vector<1x64xf32>
    %161 = math.tanh %160 : vector<1x64xf32>
    %162 = vector.extract_strided_slice %159 {offsets = [0, 0], sizes = [1, 64], strides = [1, 1]} : vector<1x192xf32> to vector<1x64xf32>
    %163 = vector.extract_strided_slice %159 {offsets = [0, 64], sizes = [1, 64], strides = [1, 1]} : vector<1x192xf32> to vector<1x64xf32>
    %164 = vector.extract_strided_slice %159 {offsets = [0, 128], sizes = [1, 64], strides = [1, 1]} : vector<1x192xf32> to vector<1x64xf32>
    %165 = arith.mulf %163, %143 : vector<1x64xf32>
    %166 = arith.mulf %162, %161 : vector<1x64xf32>
    %167 = arith.addf %165, %166 : vector<1x64xf32>
    %168 = math.tanh %167 : vector<1x64xf32>
    %169 = arith.mulf %164, %168 : vector<1x64xf32>
    %170 = vector.extract_strided_slice %169 {offsets = [0, 0], sizes = [1, 32], strides = [1, 1]} : vector<1x64xf32> to vector<1x32xf32>
    %c4_39 = arith.constant 4 : index
    %c0_40 = arith.constant 0 : index
    %171 = vector.load %arg10[%c4_39, %c0_40] : memref<8x64xf32, #tpu.memory_space<vmem>>, vector<1x32xf32>
    tpu.vector_store %arg10[%c4_39, %c0_40], %170 {strides = array<i32>} : memref<8x64xf32, #tpu.memory_space<vmem>>, vector<1x32xf32>,
    %172 = vector.extract_strided_slice %169 {offsets = [0, 32], sizes = [1, 32], strides = [1, 1]} : vector<1x64xf32> to vector<1x32xf32>
    %c3_41 = arith.constant 3 : index
    %c32_42 = arith.constant 32 : index
    %173 = vector.load %arg10[%c3_41, %c32_42] : memref<8x64xf32, #tpu.memory_space<vmem>>, vector<1x32xf32>
    tpu.vector_store %arg10[%c3_41, %c32_42], %172 {strides = array<i32>} : memref<8x64xf32, #tpu.memory_space<vmem>>, vector<1x32xf32>,
    %174 = arith.select %18, %42, %30 : vector<1x256xi1>, vector<1x256xf32>
    %175 = arith.truncf %169 : vector<1x64xf32> to vector<1x64xbf16>
    %cst_43 = arith.constant dense<0.000000e+00> : vector<1x256xf32>
    %176 = tpu.matmul %175, %51, %cst_43 {dimension_numbers = #tpu.dot_dimension_numbers<[1], [0], [0], [1], [0, 0, 1, 1], [], []>} : vector<1x64xbf16>, vector<64x256xbf16>, vector<1x256xf32> -> vector<1x256xf32>
    %177 = arith.addf %174, %176 : vector<1x256xf32>
    %178 = vector.extract_strided_slice %177 {offsets = [0, 0], sizes = [1, 192], strides = [1, 1]} : vector<1x256xf32> to vector<1x192xf32>
    %179 = arith.negf %178 : vector<1x192xf32>
    %180 = math.exp %179 : vector<1x192xf32>
    %cst_44 = arith.constant 1.000000e+00 : f32
    %181 = vector.broadcast %cst_44 : f32 to vector<1x192xf32>
    %182 = arith.addf %181, %180 : vector<1x192xf32>
    %183 = arith.divf %181, %182 : vector<1x192xf32>
    %184 = vector.extract_strided_slice %177 {offsets = [0, 192], sizes = [1, 64], strides = [1, 1]} : vector<1x256xf32> to vector<1x64xf32>
    %185 = math.tanh %184 : vector<1x64xf32>
    %186 = vector.extract_strided_slice %183 {offsets = [0, 0], sizes = [1, 64], strides = [1, 1]} : vector<1x192xf32> to vector<1x64xf32>
    %187 = vector.extract_strided_slice %183 {offsets = [0, 64], sizes = [1, 64], strides = [1, 1]} : vector<1x192xf32> to vector<1x64xf32>
    %188 = vector.extract_strided_slice %183 {offsets = [0, 128], sizes = [1, 64], strides = [1, 1]} : vector<1x192xf32> to vector<1x64xf32>
    %189 = arith.mulf %187, %167 : vector<1x64xf32>
    %190 = arith.mulf %186, %185 : vector<1x64xf32>
    %191 = arith.addf %189, %190 : vector<1x64xf32>
    %192 = math.tanh %191 : vector<1x64xf32>
    %193 = arith.mulf %188, %192 : vector<1x64xf32>
    %194 = vector.extract_strided_slice %193 {offsets = [0, 0], sizes = [1, 32], strides = [1, 1]} : vector<1x64xf32> to vector<1x32xf32>
    %c5_45 = arith.constant 5 : index
    %c0_46 = arith.constant 0 : index
    %195 = vector.load %arg10[%c5_45, %c0_46] : memref<8x64xf32, #tpu.memory_space<vmem>>, vector<1x32xf32>
    tpu.vector_store %arg10[%c5_45, %c0_46], %194 {strides = array<i32>} : memref<8x64xf32, #tpu.memory_space<vmem>>, vector<1x32xf32>,
    %196 = vector.extract_strided_slice %193 {offsets = [0, 32], sizes = [1, 32], strides = [1, 1]} : vector<1x64xf32> to vector<1x32xf32>
    %c2_47 = arith.constant 2 : index
    %c32_48 = arith.constant 32 : index
    %197 = vector.load %arg10[%c2_47, %c32_48] : memref<8x64xf32, #tpu.memory_space<vmem>>, vector<1x32xf32>
    tpu.vector_store %arg10[%c2_47, %c32_48], %196 {strides = array<i32>} : memref<8x64xf32, #tpu.memory_space<vmem>>, vector<1x32xf32>,
    %198 = arith.select %18, %46, %26 : vector<1x256xi1>, vector<1x256xf32>
    %199 = arith.truncf %193 : vector<1x64xf32> to vector<1x64xbf16>
    %cst_49 = arith.constant dense<0.000000e+00> : vector<1x256xf32>
    %200 = tpu.matmul %199, %51, %cst_49 {dimension_numbers = #tpu.dot_dimension_numbers<[1], [0], [0], [1], [0, 0, 1, 1], [], []>} : vector<1x64xbf16>, vector<64x256xbf16>, vector<1x256xf32> -> vector<1x256xf32>
    %201 = arith.addf %198, %200 : vector<1x256xf32>
    %202 = vector.extract_strided_slice %201 {offsets = [0, 0], sizes = [1, 192], strides = [1, 1]} : vector<1x256xf32> to vector<1x192xf32>
    %203 = arith.negf %202 : vector<1x192xf32>
    %204 = math.exp %203 : vector<1x192xf32>
    %cst_50 = arith.constant 1.000000e+00 : f32
    %205 = vector.broadcast %cst_50 : f32 to vector<1x192xf32>
    %206 = arith.addf %205, %204 : vector<1x192xf32>
    %207 = arith.divf %205, %206 : vector<1x192xf32>
    %208 = vector.extract_strided_slice %201 {offsets = [0, 192], sizes = [1, 64], strides = [1, 1]} : vector<1x256xf32> to vector<1x64xf32>
    %209 = math.tanh %208 : vector<1x64xf32>
    %210 = vector.extract_strided_slice %207 {offsets = [0, 0], sizes = [1, 64], strides = [1, 1]} : vector<1x192xf32> to vector<1x64xf32>
    %211 = vector.extract_strided_slice %207 {offsets = [0, 64], sizes = [1, 64], strides = [1, 1]} : vector<1x192xf32> to vector<1x64xf32>
    %212 = vector.extract_strided_slice %207 {offsets = [0, 128], sizes = [1, 64], strides = [1, 1]} : vector<1x192xf32> to vector<1x64xf32>
    %213 = arith.mulf %211, %191 : vector<1x64xf32>
    %214 = arith.mulf %210, %209 : vector<1x64xf32>
    %215 = arith.addf %213, %214 : vector<1x64xf32>
    %216 = math.tanh %215 : vector<1x64xf32>
    %217 = arith.mulf %212, %216 : vector<1x64xf32>
    %218 = vector.extract_strided_slice %217 {offsets = [0, 0], sizes = [1, 32], strides = [1, 1]} : vector<1x64xf32> to vector<1x32xf32>
    %c6_51 = arith.constant 6 : index
    %c0_52 = arith.constant 0 : index
    %219 = vector.load %arg10[%c6_51, %c0_52] : memref<8x64xf32, #tpu.memory_space<vmem>>, vector<1x32xf32>
    tpu.vector_store %arg10[%c6_51, %c0_52], %218 {strides = array<i32>} : memref<8x64xf32, #tpu.memory_space<vmem>>, vector<1x32xf32>,
    %220 = vector.extract_strided_slice %217 {offsets = [0, 32], sizes = [1, 32], strides = [1, 1]} : vector<1x64xf32> to vector<1x32xf32>
    %c1_53 = arith.constant 1 : index
    %c32_54 = arith.constant 32 : index
    %221 = vector.load %arg10[%c1_53, %c32_54] : memref<8x64xf32, #tpu.memory_space<vmem>>, vector<1x32xf32>
    tpu.vector_store %arg10[%c1_53, %c32_54], %220 {strides = array<i32>} : memref<8x64xf32, #tpu.memory_space<vmem>>, vector<1x32xf32>,
    %222 = arith.select %18, %50, %22 : vector<1x256xi1>, vector<1x256xf32>
    %223 = arith.truncf %217 : vector<1x64xf32> to vector<1x64xbf16>
    %cst_55 = arith.constant dense<0.000000e+00> : vector<1x256xf32>
    %224 = tpu.matmul %223, %51, %cst_55 {dimension_numbers = #tpu.dot_dimension_numbers<[1], [0], [0], [1], [0, 0, 1, 1], [], []>} : vector<1x64xbf16>, vector<64x256xbf16>, vector<1x256xf32> -> vector<1x256xf32>
    %225 = arith.addf %222, %224 : vector<1x256xf32>
    %226 = vector.extract_strided_slice %225 {offsets = [0, 0], sizes = [1, 192], strides = [1, 1]} : vector<1x256xf32> to vector<1x192xf32>
    %227 = arith.negf %226 : vector<1x192xf32>
    %228 = math.exp %227 : vector<1x192xf32>
    %cst_56 = arith.constant 1.000000e+00 : f32
    %229 = vector.broadcast %cst_56 : f32 to vector<1x192xf32>
    %230 = arith.addf %229, %228 : vector<1x192xf32>
    %231 = arith.divf %229, %230 : vector<1x192xf32>
    %232 = vector.extract_strided_slice %225 {offsets = [0, 192], sizes = [1, 64], strides = [1, 1]} : vector<1x256xf32> to vector<1x64xf32>
    %233 = math.tanh %232 : vector<1x64xf32>
    %234 = vector.extract_strided_slice %231 {offsets = [0, 0], sizes = [1, 64], strides = [1, 1]} : vector<1x192xf32> to vector<1x64xf32>
    %235 = vector.extract_strided_slice %231 {offsets = [0, 64], sizes = [1, 64], strides = [1, 1]} : vector<1x192xf32> to vector<1x64xf32>
    %236 = vector.extract_strided_slice %231 {offsets = [0, 128], sizes = [1, 64], strides = [1, 1]} : vector<1x192xf32> to vector<1x64xf32>
    %237 = arith.mulf %235, %215 : vector<1x64xf32>
    %238 = arith.mulf %234, %233 : vector<1x64xf32>
    %239 = arith.addf %237, %238 : vector<1x64xf32>
    %240 = math.tanh %239 : vector<1x64xf32>
    %241 = arith.mulf %236, %240 : vector<1x64xf32>
    %242 = vector.extract_strided_slice %241 {offsets = [0, 0], sizes = [1, 32], strides = [1, 1]} : vector<1x64xf32> to vector<1x32xf32>
    %c7_57 = arith.constant 7 : index
    %c0_58 = arith.constant 0 : index
    %243 = vector.load %arg10[%c7_57, %c0_58] : memref<8x64xf32, #tpu.memory_space<vmem>>, vector<1x32xf32>
    tpu.vector_store %arg10[%c7_57, %c0_58], %242 {strides = array<i32>} : memref<8x64xf32, #tpu.memory_space<vmem>>, vector<1x32xf32>,
    %244 = vector.extract_strided_slice %241 {offsets = [0, 32], sizes = [1, 32], strides = [1, 1]} : vector<1x64xf32> to vector<1x32xf32>
    %c0_59 = arith.constant 0 : index
    %c32_60 = arith.constant 32 : index
    %245 = vector.load %arg10[%c0_59, %c32_60] : memref<8x64xf32, #tpu.memory_space<vmem>>, vector<1x32xf32>
    tpu.vector_store %arg10[%c0_59, %c32_60], %244 {strides = array<i32>} : memref<8x64xf32, #tpu.memory_space<vmem>>, vector<1x32xf32>,
    %c0_61 = arith.constant 0 : index
    %c0_62 = arith.constant 0 : index
    %246 = vector.load %arg10[%c0_61, %c0_62] : memref<8x64xf32, #tpu.memory_space<vmem>>, vector<8x64xf32>
    %247 = arith.truncf %246 : vector<8x64xf32> to vector<8x64xbf16>
    %c0_63 = arith.constant 0 : index
    %c0_64 = arith.constant 0 : index
    %248 = vector.load %arg4[%c0_63, %c0_64] : memref<64x256xbf16, #tpu.memory_space<vmem>>, vector<64x256xbf16>
    %cst_65 = arith.constant dense<0.000000e+00> : vector<8x256xf32>
    %249 = tpu.matmul %247, %248, %cst_65 {dimension_numbers = #tpu.dot_dimension_numbers<[1], [0], [0], [1], [0, 0, 1, 1], [], []>} : vector<8x64xbf16>, vector<64x256xbf16>, vector<8x256xf32> -> vector<8x256xf32>
    %c0_66 = arith.constant 0 : index
    %c0_67 = arith.constant 0 : index
    %250 = vector.load %arg5[%c0_66, %c0_67] : memref<1x256xf32, #tpu.memory_space<vmem>>, vector<1x256xf32>
    %251 = vector.broadcast %250 : vector<1x256xf32> to vector<8x256xf32>
    %252 = arith.addf %249, %251 : vector<8x256xf32>
    %253 = vector.extract_strided_slice %252 {offsets = [0, 0], sizes = [1, 256], strides = [1, 1]} : vector<8x256xf32> to vector<1x256xf32>
    %254 = vector.extract_strided_slice %252 {offsets = [1, 0], sizes = [1, 256], strides = [1, 1]} : vector<8x256xf32> to vector<1x256xf32>
    %255 = vector.extract_strided_slice %252 {offsets = [2, 0], sizes = [1, 256], strides = [1, 1]} : vector<8x256xf32> to vector<1x256xf32>
    %256 = vector.extract_strided_slice %252 {offsets = [3, 0], sizes = [1, 256], strides = [1, 1]} : vector<8x256xf32> to vector<1x256xf32>
    %257 = vector.extract_strided_slice %252 {offsets = [4, 0], sizes = [1, 256], strides = [1, 1]} : vector<8x256xf32> to vector<1x256xf32>
    %258 = vector.extract_strided_slice %252 {offsets = [5, 0], sizes = [1, 256], strides = [1, 1]} : vector<8x256xf32> to vector<1x256xf32>
    %259 = vector.extract_strided_slice %252 {offsets = [6, 0], sizes = [1, 256], strides = [1, 1]} : vector<8x256xf32> to vector<1x256xf32>
    %260 = vector.extract_strided_slice %252 {offsets = [7, 0], sizes = [1, 256], strides = [1, 1]} : vector<8x256xf32> to vector<1x256xf32>
    %c0_68 = arith.constant 0 : index
    %c0_69 = arith.constant 0 : index
    %261 = vector.load %arg6[%c0_68, %c0_69] : memref<64x256xbf16, #tpu.memory_space<vmem>>, vector<64x256xbf16>
    %cst_70 = arith.constant 0.000000e+00 : f32
    %262 = vector.broadcast %cst_70 : f32 to vector<1x64xf32>
    %cst_71 = arith.constant 0.000000e+00 : f32
    %263 = vector.broadcast %cst_71 : f32 to vector<1x64xf32>
    %264 = arith.select %18, %253, %260 : vector<1x256xi1>, vector<1x256xf32>
    %265 = arith.truncf %262 : vector<1x64xf32> to vector<1x64xbf16>
    %cst_72 = arith.constant dense<0.000000e+00> : vector<1x256xf32>
    %266 = tpu.matmul %265, %261, %cst_72 {dimension_numbers = #tpu.dot_dimension_numbers<[1], [0], [0], [1], [0, 0, 1, 1], [], []>} : vector<1x64xbf16>, vector<64x256xbf16>, vector<1x256xf32> -> vector<1x256xf32>
    %267 = arith.addf %264, %266 : vector<1x256xf32>
    %268 = vector.extract_strided_slice %267 {offsets = [0, 0], sizes = [1, 192], strides = [1, 1]} : vector<1x256xf32> to vector<1x192xf32>
    %269 = arith.negf %268 : vector<1x192xf32>
    %270 = math.exp %269 : vector<1x192xf32>
    %cst_73 = arith.constant 1.000000e+00 : f32
    %271 = vector.broadcast %cst_73 : f32 to vector<1x192xf32>
    %272 = arith.addf %271, %270 : vector<1x192xf32>
    %273 = arith.divf %271, %272 : vector<1x192xf32>
    %274 = vector.extract_strided_slice %267 {offsets = [0, 192], sizes = [1, 64], strides = [1, 1]} : vector<1x256xf32> to vector<1x64xf32>
    %275 = math.tanh %274 : vector<1x64xf32>
    %276 = vector.extract_strided_slice %273 {offsets = [0, 0], sizes = [1, 64], strides = [1, 1]} : vector<1x192xf32> to vector<1x64xf32>
    %277 = vector.extract_strided_slice %273 {offsets = [0, 64], sizes = [1, 64], strides = [1, 1]} : vector<1x192xf32> to vector<1x64xf32>
    %278 = vector.extract_strided_slice %273 {offsets = [0, 128], sizes = [1, 64], strides = [1, 1]} : vector<1x192xf32> to vector<1x64xf32>
    %279 = arith.mulf %277, %263 : vector<1x64xf32>
    %280 = arith.mulf %276, %275 : vector<1x64xf32>
    %281 = arith.addf %279, %280 : vector<1x64xf32>
    %282 = math.tanh %281 : vector<1x64xf32>
    %283 = arith.mulf %278, %282 : vector<1x64xf32>
    %284 = vector.extract_strided_slice %283 {offsets = [0, 0], sizes = [1, 32], strides = [1, 1]} : vector<1x64xf32> to vector<1x32xf32>
    %c0_74 = arith.constant 0 : index
    %c0_75 = arith.constant 0 : index
    %285 = vector.load %arg10[%c0_74, %c0_75] : memref<8x64xf32, #tpu.memory_space<vmem>>, vector<1x32xf32>
    tpu.vector_store %arg10[%c0_74, %c0_75], %284 {strides = array<i32>} : memref<8x64xf32, #tpu.memory_space<vmem>>, vector<1x32xf32>,
    %286 = vector.extract_strided_slice %283 {offsets = [0, 32], sizes = [1, 32], strides = [1, 1]} : vector<1x64xf32> to vector<1x32xf32>
    %c7_76 = arith.constant 7 : index
    %c32_77 = arith.constant 32 : index
    %287 = vector.load %arg10[%c7_76, %c32_77] : memref<8x64xf32, #tpu.memory_space<vmem>>, vector<1x32xf32>
    tpu.vector_store %arg10[%c7_76, %c32_77], %286 {strides = array<i32>} : memref<8x64xf32, #tpu.memory_space<vmem>>, vector<1x32xf32>,
    %288 = arith.select %18, %254, %259 : vector<1x256xi1>, vector<1x256xf32>
    %289 = arith.truncf %283 : vector<1x64xf32> to vector<1x64xbf16>
    %cst_78 = arith.constant dense<0.000000e+00> : vector<1x256xf32>
    %290 = tpu.matmul %289, %261, %cst_78 {dimension_numbers = #tpu.dot_dimension_numbers<[1], [0], [0], [1], [0, 0, 1, 1], [], []>} : vector<1x64xbf16>, vector<64x256xbf16>, vector<1x256xf32> -> vector<1x256xf32>
    %291 = arith.addf %288, %290 : vector<1x256xf32>
    %292 = vector.extract_strided_slice %291 {offsets = [0, 0], sizes = [1, 192], strides = [1, 1]} : vector<1x256xf32> to vector<1x192xf32>
    %293 = arith.negf %292 : vector<1x192xf32>
    %294 = math.exp %293 : vector<1x192xf32>
    %cst_79 = arith.constant 1.000000e+00 : f32
    %295 = vector.broadcast %cst_79 : f32 to vector<1x192xf32>
    %296 = arith.addf %295, %294 : vector<1x192xf32>
    %297 = arith.divf %295, %296 : vector<1x192xf32>
    %298 = vector.extract_strided_slice %291 {offsets = [0, 192], sizes = [1, 64], strides = [1, 1]} : vector<1x256xf32> to vector<1x64xf32>
    %299 = math.tanh %298 : vector<1x64xf32>
    %300 = vector.extract_strided_slice %297 {offsets = [0, 0], sizes = [1, 64], strides = [1, 1]} : vector<1x192xf32> to vector<1x64xf32>
    %301 = vector.extract_strided_slice %297 {offsets = [0, 64], sizes = [1, 64], strides = [1, 1]} : vector<1x192xf32> to vector<1x64xf32>
    %302 = vector.extract_strided_slice %297 {offsets = [0, 128], sizes = [1, 64], strides = [1, 1]} : vector<1x192xf32> to vector<1x64xf32>
    %303 = arith.mulf %301, %281 : vector<1x64xf32>
    %304 = arith.mulf %300, %299 : vector<1x64xf32>
    %305 = arith.addf %303, %304 : vector<1x64xf32>
    %306 = math.tanh %305 : vector<1x64xf32>
    %307 = arith.mulf %302, %306 : vector<1x64xf32>
    %308 = vector.extract_strided_slice %307 {offsets = [0, 0], sizes = [1, 32], strides = [1, 1]} : vector<1x64xf32> to vector<1x32xf32>
    %c1_80 = arith.constant 1 : index
    %c0_81 = arith.constant 0 : index
    %309 = vector.load %arg10[%c1_80, %c0_81] : memref<8x64xf32, #tpu.memory_space<vmem>>, vector<1x32xf32>
    tpu.vector_store %arg10[%c1_80, %c0_81], %308 {strides = array<i32>} : memref<8x64xf32, #tpu.memory_space<vmem>>, vector<1x32xf32>,
    %310 = vector.extract_strided_slice %307 {offsets = [0, 32], sizes = [1, 32], strides = [1, 1]} : vector<1x64xf32> to vector<1x32xf32>
    %c6_82 = arith.constant 6 : index
    %c32_83 = arith.constant 32 : index
    %311 = vector.load %arg10[%c6_82, %c32_83] : memref<8x64xf32, #tpu.memory_space<vmem>>, vector<1x32xf32>
    tpu.vector_store %arg10[%c6_82, %c32_83], %310 {strides = array<i32>} : memref<8x64xf32, #tpu.memory_space<vmem>>, vector<1x32xf32>,
    %312 = arith.select %18, %255, %258 : vector<1x256xi1>, vector<1x256xf32>
    %313 = arith.truncf %307 : vector<1x64xf32> to vector<1x64xbf16>
    %cst_84 = arith.constant dense<0.000000e+00> : vector<1x256xf32>
    %314 = tpu.matmul %313, %261, %cst_84 {dimension_numbers = #tpu.dot_dimension_numbers<[1], [0], [0], [1], [0, 0, 1, 1], [], []>} : vector<1x64xbf16>, vector<64x256xbf16>, vector<1x256xf32> -> vector<1x256xf32>
    %315 = arith.addf %312, %314 : vector<1x256xf32>
    %316 = vector.extract_strided_slice %315 {offsets = [0, 0], sizes = [1, 192], strides = [1, 1]} : vector<1x256xf32> to vector<1x192xf32>
    %317 = arith.negf %316 : vector<1x192xf32>
    %318 = math.exp %317 : vector<1x192xf32>
    %cst_85 = arith.constant 1.000000e+00 : f32
    %319 = vector.broadcast %cst_85 : f32 to vector<1x192xf32>
    %320 = arith.addf %319, %318 : vector<1x192xf32>
    %321 = arith.divf %319, %320 : vector<1x192xf32>
    %322 = vector.extract_strided_slice %315 {offsets = [0, 192], sizes = [1, 64], strides = [1, 1]} : vector<1x256xf32> to vector<1x64xf32>
    %323 = math.tanh %322 : vector<1x64xf32>
    %324 = vector.extract_strided_slice %321 {offsets = [0, 0], sizes = [1, 64], strides = [1, 1]} : vector<1x192xf32> to vector<1x64xf32>
    %325 = vector.extract_strided_slice %321 {offsets = [0, 64], sizes = [1, 64], strides = [1, 1]} : vector<1x192xf32> to vector<1x64xf32>
    %326 = vector.extract_strided_slice %321 {offsets = [0, 128], sizes = [1, 64], strides = [1, 1]} : vector<1x192xf32> to vector<1x64xf32>
    %327 = arith.mulf %325, %305 : vector<1x64xf32>
    %328 = arith.mulf %324, %323 : vector<1x64xf32>
    %329 = arith.addf %327, %328 : vector<1x64xf32>
    %330 = math.tanh %329 : vector<1x64xf32>
    %331 = arith.mulf %326, %330 : vector<1x64xf32>
    %332 = vector.extract_strided_slice %331 {offsets = [0, 0], sizes = [1, 32], strides = [1, 1]} : vector<1x64xf32> to vector<1x32xf32>
    %c2_86 = arith.constant 2 : index
    %c0_87 = arith.constant 0 : index
    %333 = vector.load %arg10[%c2_86, %c0_87] : memref<8x64xf32, #tpu.memory_space<vmem>>, vector<1x32xf32>
    tpu.vector_store %arg10[%c2_86, %c0_87], %332 {strides = array<i32>} : memref<8x64xf32, #tpu.memory_space<vmem>>, vector<1x32xf32>,
    %334 = vector.extract_strided_slice %331 {offsets = [0, 32], sizes = [1, 32], strides = [1, 1]} : vector<1x64xf32> to vector<1x32xf32>
    %c5_88 = arith.constant 5 : index
    %c32_89 = arith.constant 32 : index
    %335 = vector.load %arg10[%c5_88, %c32_89] : memref<8x64xf32, #tpu.memory_space<vmem>>, vector<1x32xf32>
    tpu.vector_store %arg10[%c5_88, %c32_89], %334 {strides = array<i32>} : memref<8x64xf32, #tpu.memory_space<vmem>>, vector<1x32xf32>,
    %336 = arith.select %18, %256, %257 : vector<1x256xi1>, vector<1x256xf32>
    %337 = arith.truncf %331 : vector<1x64xf32> to vector<1x64xbf16>
    %cst_90 = arith.constant dense<0.000000e+00> : vector<1x256xf32>
    %338 = tpu.matmul %337, %261, %cst_90 {dimension_numbers = #tpu.dot_dimension_numbers<[1], [0], [0], [1], [0, 0, 1, 1], [], []>} : vector<1x64xbf16>, vector<64x256xbf16>, vector<1x256xf32> -> vector<1x256xf32>
    %339 = arith.addf %336, %338 : vector<1x256xf32>
    %340 = vector.extract_strided_slice %339 {offsets = [0, 0], sizes = [1, 192], strides = [1, 1]} : vector<1x256xf32> to vector<1x192xf32>
    %341 = arith.negf %340 : vector<1x192xf32>
    %342 = math.exp %341 : vector<1x192xf32>
    %cst_91 = arith.constant 1.000000e+00 : f32
    %343 = vector.broadcast %cst_91 : f32 to vector<1x192xf32>
    %344 = arith.addf %343, %342 : vector<1x192xf32>
    %345 = arith.divf %343, %344 : vector<1x192xf32>
    %346 = vector.extract_strided_slice %339 {offsets = [0, 192], sizes = [1, 64], strides = [1, 1]} : vector<1x256xf32> to vector<1x64xf32>
    %347 = math.tanh %346 : vector<1x64xf32>
    %348 = vector.extract_strided_slice %345 {offsets = [0, 0], sizes = [1, 64], strides = [1, 1]} : vector<1x192xf32> to vector<1x64xf32>
    %349 = vector.extract_strided_slice %345 {offsets = [0, 64], sizes = [1, 64], strides = [1, 1]} : vector<1x192xf32> to vector<1x64xf32>
    %350 = vector.extract_strided_slice %345 {offsets = [0, 128], sizes = [1, 64], strides = [1, 1]} : vector<1x192xf32> to vector<1x64xf32>
    %351 = arith.mulf %349, %329 : vector<1x64xf32>
    %352 = arith.mulf %348, %347 : vector<1x64xf32>
    %353 = arith.addf %351, %352 : vector<1x64xf32>
    %354 = math.tanh %353 : vector<1x64xf32>
    %355 = arith.mulf %350, %354 : vector<1x64xf32>
    %356 = vector.extract_strided_slice %355 {offsets = [0, 0], sizes = [1, 32], strides = [1, 1]} : vector<1x64xf32> to vector<1x32xf32>
    %c3_92 = arith.constant 3 : index
    %c0_93 = arith.constant 0 : index
    %357 = vector.load %arg10[%c3_92, %c0_93] : memref<8x64xf32, #tpu.memory_space<vmem>>, vector<1x32xf32>
    tpu.vector_store %arg10[%c3_92, %c0_93], %356 {strides = array<i32>} : memref<8x64xf32, #tpu.memory_space<vmem>>, vector<1x32xf32>,
    %358 = vector.extract_strided_slice %355 {offsets = [0, 32], sizes = [1, 32], strides = [1, 1]} : vector<1x64xf32> to vector<1x32xf32>
    %c4_94 = arith.constant 4 : index
    %c32_95 = arith.constant 32 : index
    %359 = vector.load %arg10[%c4_94, %c32_95] : memref<8x64xf32, #tpu.memory_space<vmem>>, vector<1x32xf32>
    tpu.vector_store %arg10[%c4_94, %c32_95], %358 {strides = array<i32>} : memref<8x64xf32, #tpu.memory_space<vmem>>, vector<1x32xf32>,
    %360 = arith.select %18, %257, %256 : vector<1x256xi1>, vector<1x256xf32>
    %361 = arith.truncf %355 : vector<1x64xf32> to vector<1x64xbf16>
    %cst_96 = arith.constant dense<0.000000e+00> : vector<1x256xf32>
    %362 = tpu.matmul %361, %261, %cst_96 {dimension_numbers = #tpu.dot_dimension_numbers<[1], [0], [0], [1], [0, 0, 1, 1], [], []>} : vector<1x64xbf16>, vector<64x256xbf16>, vector<1x256xf32> -> vector<1x256xf32>
    %363 = arith.addf %360, %362 : vector<1x256xf32>
    %364 = vector.extract_strided_slice %363 {offsets = [0, 0], sizes = [1, 192], strides = [1, 1]} : vector<1x256xf32> to vector<1x192xf32>
    %365 = arith.negf %364 : vector<1x192xf32>
    %366 = math.exp %365 : vector<1x192xf32>
    %cst_97 = arith.constant 1.000000e+00 : f32
    %367 = vector.broadcast %cst_97 : f32 to vector<1x192xf32>
    %368 = arith.addf %367, %366 : vector<1x192xf32>
    %369 = arith.divf %367, %368 : vector<1x192xf32>
    %370 = vector.extract_strided_slice %363 {offsets = [0, 192], sizes = [1, 64], strides = [1, 1]} : vector<1x256xf32> to vector<1x64xf32>
    %371 = math.tanh %370 : vector<1x64xf32>
    %372 = vector.extract_strided_slice %369 {offsets = [0, 0], sizes = [1, 64], strides = [1, 1]} : vector<1x192xf32> to vector<1x64xf32>
    %373 = vector.extract_strided_slice %369 {offsets = [0, 64], sizes = [1, 64], strides = [1, 1]} : vector<1x192xf32> to vector<1x64xf32>
    %374 = vector.extract_strided_slice %369 {offsets = [0, 128], sizes = [1, 64], strides = [1, 1]} : vector<1x192xf32> to vector<1x64xf32>
    %375 = arith.mulf %373, %353 : vector<1x64xf32>
    %376 = arith.mulf %372, %371 : vector<1x64xf32>
    %377 = arith.addf %375, %376 : vector<1x64xf32>
    %378 = math.tanh %377 : vector<1x64xf32>
    %379 = arith.mulf %374, %378 : vector<1x64xf32>
    %380 = vector.extract_strided_slice %379 {offsets = [0, 0], sizes = [1, 32], strides = [1, 1]} : vector<1x64xf32> to vector<1x32xf32>
    %c4_98 = arith.constant 4 : index
    %c0_99 = arith.constant 0 : index
    %381 = vector.load %arg10[%c4_98, %c0_99] : memref<8x64xf32, #tpu.memory_space<vmem>>, vector<1x32xf32>
    tpu.vector_store %arg10[%c4_98, %c0_99], %380 {strides = array<i32>} : memref<8x64xf32, #tpu.memory_space<vmem>>, vector<1x32xf32>,
    %382 = vector.extract_strided_slice %379 {offsets = [0, 32], sizes = [1, 32], strides = [1, 1]} : vector<1x64xf32> to vector<1x32xf32>
    %c3_100 = arith.constant 3 : index
    %c32_101 = arith.constant 32 : index
    %383 = vector.load %arg10[%c3_100, %c32_101] : memref<8x64xf32, #tpu.memory_space<vmem>>, vector<1x32xf32>
    tpu.vector_store %arg10[%c3_100, %c32_101], %382 {strides = array<i32>} : memref<8x64xf32, #tpu.memory_space<vmem>>, vector<1x32xf32>,
    %384 = arith.select %18, %258, %255 : vector<1x256xi1>, vector<1x256xf32>
    %385 = arith.truncf %379 : vector<1x64xf32> to vector<1x64xbf16>
    %cst_102 = arith.constant dense<0.000000e+00> : vector<1x256xf32>
    %386 = tpu.matmul %385, %261, %cst_102 {dimension_numbers = #tpu.dot_dimension_numbers<[1], [0], [0], [1], [0, 0, 1, 1], [], []>} : vector<1x64xbf16>, vector<64x256xbf16>, vector<1x256xf32> -> vector<1x256xf32>
    %387 = arith.addf %384, %386 : vector<1x256xf32>
    %388 = vector.extract_strided_slice %387 {offsets = [0, 0], sizes = [1, 192], strides = [1, 1]} : vector<1x256xf32> to vector<1x192xf32>
    %389 = arith.negf %388 : vector<1x192xf32>
    %390 = math.exp %389 : vector<1x192xf32>
    %cst_103 = arith.constant 1.000000e+00 : f32
    %391 = vector.broadcast %cst_103 : f32 to vector<1x192xf32>
    %392 = arith.addf %391, %390 : vector<1x192xf32>
    %393 = arith.divf %391, %392 : vector<1x192xf32>
    %394 = vector.extract_strided_slice %387 {offsets = [0, 192], sizes = [1, 64], strides = [1, 1]} : vector<1x256xf32> to vector<1x64xf32>
    %395 = math.tanh %394 : vector<1x64xf32>
    %396 = vector.extract_strided_slice %393 {offsets = [0, 0], sizes = [1, 64], strides = [1, 1]} : vector<1x192xf32> to vector<1x64xf32>
    %397 = vector.extract_strided_slice %393 {offsets = [0, 64], sizes = [1, 64], strides = [1, 1]} : vector<1x192xf32> to vector<1x64xf32>
    %398 = vector.extract_strided_slice %393 {offsets = [0, 128], sizes = [1, 64], strides = [1, 1]} : vector<1x192xf32> to vector<1x64xf32>
    %399 = arith.mulf %397, %377 : vector<1x64xf32>
    %400 = arith.mulf %396, %395 : vector<1x64xf32>
    %401 = arith.addf %399, %400 : vector<1x64xf32>
    %402 = math.tanh %401 : vector<1x64xf32>
    %403 = arith.mulf %398, %402 : vector<1x64xf32>
    %404 = vector.extract_strided_slice %403 {offsets = [0, 0], sizes = [1, 32], strides = [1, 1]} : vector<1x64xf32> to vector<1x32xf32>
    %c5_104 = arith.constant 5 : index
    %c0_105 = arith.constant 0 : index
    %405 = vector.load %arg10[%c5_104, %c0_105] : memref<8x64xf32, #tpu.memory_space<vmem>>, vector<1x32xf32>
    tpu.vector_store %arg10[%c5_104, %c0_105], %404 {strides = array<i32>} : memref<8x64xf32, #tpu.memory_space<vmem>>, vector<1x32xf32>,
    %406 = vector.extract_strided_slice %403 {offsets = [0, 32], sizes = [1, 32], strides = [1, 1]} : vector<1x64xf32> to vector<1x32xf32>
    %c2_106 = arith.constant 2 : index
    %c32_107 = arith.constant 32 : index
    %407 = vector.load %arg10[%c2_106, %c32_107] : memref<8x64xf32, #tpu.memory_space<vmem>>, vector<1x32xf32>
    tpu.vector_store %arg10[%c2_106, %c32_107], %406 {strides = array<i32>} : memref<8x64xf32, #tpu.memory_space<vmem>>, vector<1x32xf32>,
    %408 = arith.select %18, %259, %254 : vector<1x256xi1>, vector<1x256xf32>
    %409 = arith.truncf %403 : vector<1x64xf32> to vector<1x64xbf16>
    %cst_108 = arith.constant dense<0.000000e+00> : vector<1x256xf32>
    %410 = tpu.matmul %409, %261, %cst_108 {dimension_numbers = #tpu.dot_dimension_numbers<[1], [0], [0], [1], [0, 0, 1, 1], [], []>} : vector<1x64xbf16>, vector<64x256xbf16>, vector<1x256xf32> -> vector<1x256xf32>
    %411 = arith.addf %408, %410 : vector<1x256xf32>
    %412 = vector.extract_strided_slice %411 {offsets = [0, 0], sizes = [1, 192], strides = [1, 1]} : vector<1x256xf32> to vector<1x192xf32>
    %413 = arith.negf %412 : vector<1x192xf32>
    %414 = math.exp %413 : vector<1x192xf32>
    %cst_109 = arith.constant 1.000000e+00 : f32
    %415 = vector.broadcast %cst_109 : f32 to vector<1x192xf32>
    %416 = arith.addf %415, %414 : vector<1x192xf32>
    %417 = arith.divf %415, %416 : vector<1x192xf32>
    %418 = vector.extract_strided_slice %411 {offsets = [0, 192], sizes = [1, 64], strides = [1, 1]} : vector<1x256xf32> to vector<1x64xf32>
    %419 = math.tanh %418 : vector<1x64xf32>
    %420 = vector.extract_strided_slice %417 {offsets = [0, 0], sizes = [1, 64], strides = [1, 1]} : vector<1x192xf32> to vector<1x64xf32>
    %421 = vector.extract_strided_slice %417 {offsets = [0, 64], sizes = [1, 64], strides = [1, 1]} : vector<1x192xf32> to vector<1x64xf32>
    %422 = vector.extract_strided_slice %417 {offsets = [0, 128], sizes = [1, 64], strides = [1, 1]} : vector<1x192xf32> to vector<1x64xf32>
    %423 = arith.mulf %421, %401 : vector<1x64xf32>
    %424 = arith.mulf %420, %419 : vector<1x64xf32>
    %425 = arith.addf %423, %424 : vector<1x64xf32>
    %426 = math.tanh %425 : vector<1x64xf32>
    %427 = arith.mulf %422, %426 : vector<1x64xf32>
    %428 = vector.extract_strided_slice %427 {offsets = [0, 0], sizes = [1, 32], strides = [1, 1]} : vector<1x64xf32> to vector<1x32xf32>
    %c6_110 = arith.constant 6 : index
    %c0_111 = arith.constant 0 : index
    %429 = vector.load %arg10[%c6_110, %c0_111] : memref<8x64xf32, #tpu.memory_space<vmem>>, vector<1x32xf32>
    tpu.vector_store %arg10[%c6_110, %c0_111], %428 {strides = array<i32>} : memref<8x64xf32, #tpu.memory_space<vmem>>, vector<1x32xf32>,
    %430 = vector.extract_strided_slice %427 {offsets = [0, 32], sizes = [1, 32], strides = [1, 1]} : vector<1x64xf32> to vector<1x32xf32>
    %c1_112 = arith.constant 1 : index
    %c32_113 = arith.constant 32 : index
    %431 = vector.load %arg10[%c1_112, %c32_113] : memref<8x64xf32, #tpu.memory_space<vmem>>, vector<1x32xf32>
    tpu.vector_store %arg10[%c1_112, %c32_113], %430 {strides = array<i32>} : memref<8x64xf32, #tpu.memory_space<vmem>>, vector<1x32xf32>,
    %432 = arith.select %18, %260, %253 : vector<1x256xi1>, vector<1x256xf32>
    %433 = arith.truncf %427 : vector<1x64xf32> to vector<1x64xbf16>
    %cst_114 = arith.constant dense<0.000000e+00> : vector<1x256xf32>
    %434 = tpu.matmul %433, %261, %cst_114 {dimension_numbers = #tpu.dot_dimension_numbers<[1], [0], [0], [1], [0, 0, 1, 1], [], []>} : vector<1x64xbf16>, vector<64x256xbf16>, vector<1x256xf32> -> vector<1x256xf32>
    %435 = arith.addf %432, %434 : vector<1x256xf32>
    %436 = vector.extract_strided_slice %435 {offsets = [0, 0], sizes = [1, 192], strides = [1, 1]} : vector<1x256xf32> to vector<1x192xf32>
    %437 = arith.negf %436 : vector<1x192xf32>
    %438 = math.exp %437 : vector<1x192xf32>
    %cst_115 = arith.constant 1.000000e+00 : f32
    %439 = vector.broadcast %cst_115 : f32 to vector<1x192xf32>
    %440 = arith.addf %439, %438 : vector<1x192xf32>
    %441 = arith.divf %439, %440 : vector<1x192xf32>
    %442 = vector.extract_strided_slice %435 {offsets = [0, 192], sizes = [1, 64], strides = [1, 1]} : vector<1x256xf32> to vector<1x64xf32>
    %443 = math.tanh %442 : vector<1x64xf32>
    %444 = vector.extract_strided_slice %441 {offsets = [0, 0], sizes = [1, 64], strides = [1, 1]} : vector<1x192xf32> to vector<1x64xf32>
    %445 = vector.extract_strided_slice %441 {offsets = [0, 64], sizes = [1, 64], strides = [1, 1]} : vector<1x192xf32> to vector<1x64xf32>
    %446 = vector.extract_strided_slice %441 {offsets = [0, 128], sizes = [1, 64], strides = [1, 1]} : vector<1x192xf32> to vector<1x64xf32>
    %447 = arith.mulf %445, %425 : vector<1x64xf32>
    %448 = arith.mulf %444, %443 : vector<1x64xf32>
    %449 = arith.addf %447, %448 : vector<1x64xf32>
    %450 = math.tanh %449 : vector<1x64xf32>
    %451 = arith.mulf %446, %450 : vector<1x64xf32>
    %452 = vector.extract_strided_slice %451 {offsets = [0, 0], sizes = [1, 32], strides = [1, 1]} : vector<1x64xf32> to vector<1x32xf32>
    %c7_116 = arith.constant 7 : index
    %c0_117 = arith.constant 0 : index
    %453 = vector.load %arg10[%c7_116, %c0_117] : memref<8x64xf32, #tpu.memory_space<vmem>>, vector<1x32xf32>
    tpu.vector_store %arg10[%c7_116, %c0_117], %452 {strides = array<i32>} : memref<8x64xf32, #tpu.memory_space<vmem>>, vector<1x32xf32>,
    %454 = vector.extract_strided_slice %451 {offsets = [0, 32], sizes = [1, 32], strides = [1, 1]} : vector<1x64xf32> to vector<1x32xf32>
    %c0_118 = arith.constant 0 : index
    %c32_119 = arith.constant 32 : index
    %455 = vector.load %arg10[%c0_118, %c32_119] : memref<8x64xf32, #tpu.memory_space<vmem>>, vector<1x32xf32>
    tpu.vector_store %arg10[%c0_118, %c32_119], %454 {strides = array<i32>} : memref<8x64xf32, #tpu.memory_space<vmem>>, vector<1x32xf32>,
    %c0_120 = arith.constant 0 : index
    %c0_121 = arith.constant 0 : index
    %456 = vector.load %arg10[%c0_120, %c0_121] : memref<8x64xf32, #tpu.memory_space<vmem>>, vector<8x64xf32>
    %457 = arith.truncf %456 : vector<8x64xf32> to vector<8x64xbf16>
    %c0_122 = arith.constant 0 : index
    %c0_123 = arith.constant 0 : index
    %458 = vector.load %arg7[%c0_122, %c0_123] : memref<64x128xbf16, #tpu.memory_space<vmem>>, vector<64x128xbf16>
    %cst_124 = arith.constant dense<0.000000e+00> : vector<8x128xf32>
    %459 = tpu.matmul %457, %458, %cst_124 {dimension_numbers = #tpu.dot_dimension_numbers<[1], [0], [0], [1], [0, 0, 1, 1], [], []>} : vector<8x64xbf16>, vector<64x128xbf16>, vector<8x128xf32> -> vector<8x128xf32>
    %c0_125 = arith.constant 0 : index
    %c0_126 = arith.constant 0 : index
    %460 = vector.load %arg8[%c0_125, %c0_126] : memref<1x128xf32, #tpu.memory_space<vmem>>, vector<1x128xf32>
    %461 = vector.broadcast %460 : vector<1x128xf32> to vector<8x128xf32>
    %462 = arith.addf %459, %461 : vector<8x128xf32>
    %c0_127 = arith.constant 0 : index
    %c0_128 = arith.constant 0 : index
    %c0_129 = arith.constant 0 : index
    %463 = vector.load %arg9[%c0_127, %c0_128, %c0_129] : memref<1x8x128xf32, #tpu.memory_space<vmem>>, vector<1x8x128xf32>
    %464 = vector.shape_cast %463 : vector<1x8x128xf32> to vector<8x128xf32>
    %465 = vector.shape_cast %462 : vector<8x128xf32> to vector<1x8x128xf32>
    tpu.vector_store %arg9[%c0_127, %c0_128, %c0_129], %465 {strides = array<i32>} : memref<1x8x128xf32, #tpu.memory_space<vmem>>, vector<1x8x128xf32>,
    return
  }
  func.func @transform_0(%arg0: i32, %arg1: memref<4x8xi32, #tpu.memory_space<smem>>) -> (i32, i32) {
    %c0_i32 = arith.constant 0 : i32
    %c0_i32_0 = arith.constant 0 : i32
    %c0_i32_1 = arith.constant 0 : i32
    return %c0_i32, %c0_i32_0 : i32, i32
  }
  func.func @transform_1(%arg0: i32, %arg1: memref<4x8xi32, #tpu.memory_space<smem>>) -> (i32, i32) {
    %c0_i32 = arith.constant 0 : i32
    %c0_i32_0 = arith.constant 0 : i32
    %c0_i32_1 = arith.constant 0 : i32
    return %c0_i32, %c0_i32_0 : i32, i32
  }
  func.func @transform_2(%arg0: i32, %arg1: memref<4x8xi32, #tpu.memory_space<smem>>) -> (i32, i32) {
    %c0_i32 = arith.constant 0 : i32
    %c0_i32_0 = arith.constant 0 : i32
    %c0_i32_1 = arith.constant 0 : i32
    return %c0_i32, %c0_i32_0 : i32, i32
  }
  func.func @transform_3(%arg0: i32, %arg1: memref<4x8xi32, #tpu.memory_space<smem>>) -> (i32, i32) {
    %c0_i32 = arith.constant 0 : i32
    %c0_i32_0 = arith.constant 0 : i32
    %c0_i32_1 = arith.constant 0 : i32
    return %c0_i32, %c0_i32_0 : i32, i32
  }
  func.func @transform_4(%arg0: i32, %arg1: memref<4x8xi32, #tpu.memory_space<smem>>) -> (i32, i32) {
    %c0_i32 = arith.constant 0 : i32
    %c0_i32_0 = arith.constant 0 : i32
    %c0_i32_1 = arith.constant 0 : i32
    return %c0_i32, %c0_i32_0 : i32, i32
  }
  func.func @transform_5(%arg0: i32, %arg1: memref<4x8xi32, #tpu.memory_space<smem>>) -> (i32, i32) {
    %c0_i32 = arith.constant 0 : i32
    %c0_i32_0 = arith.constant 0 : i32
    %c0_i32_1 = arith.constant 0 : i32
    return %c0_i32, %c0_i32_0 : i32, i32
  }
  func.func @transform_6(%arg0: i32, %arg1: memref<4x8xi32, #tpu.memory_space<smem>>) -> (i32, i32) {
    %c0_i32 = arith.constant 0 : i32
    %c0_i32_0 = arith.constant 0 : i32
    %c0_i32_1 = arith.constant 0 : i32
    return %c0_i32, %c0_i32_0 : i32, i32
  }
  func.func @transform_7(%arg0: i32, %arg1: memref<4x8xi32, #tpu.memory_space<smem>>) -> (i32, i32, i32) {
    %c0_i32 = arith.constant 0 : i32
    %c0_i32_0 = arith.constant 0 : i32
    %c0_i32_1 = arith.constant 0 : i32
    return %arg0, %c0_i32, %c0_i32_0 : i32, i32, i32
  }
}

</mosaic_0001>

<bundles_post_ra>
// kernel: tpu_custom_call.1
= control target key start
LH: loop header
LB: loop body
LE: loop exit
PB: predicated region body
PF: predicated region fallthrough
CT: control target
= control target key end

     0   :  { %s3044_s27 = smov [#allocation4]   ;;  %s3752_s0 = inlined_call_operand.hbm [shape: s32[4,8], index: 0, kind: input, shape index: {}]   ;;  %s3753_s1 = inlined_call_operand.hbm [shape: f32[51,256], index: 1, kind: input, shape index: {}]   ;;  %s3754_s2 = inlined_call_operand.hbm [shape: bf16[64,256], index: 2, kind: input, shape index: {}]   ;;  %s3755_s3 = inlined_call_operand.hbm [shape: bf16[64,256], index: 3, kind: input, shape index: {}]   ;;  %s3756_s4 = inlined_call_operand.vmem [shape: f32[1,256], index: 4, kind: input, shape index: {}]   ;;  %s3757_s5 = inlined_call_operand.hbm [shape: bf16[64,256], index: 5, kind: input, shape index: {}]   ;;  %s3758_s6 = inlined_call_operand.hbm [shape: bf16[64,128], index: 6, kind: input, shape index: {}]   ;;  %s3759_s7 = inlined_call_operand.vmem [shape: f32[1,128], index: 7, kind: input, shape index: {}]   ;;  %s3760_s8 = inlined_call_operand.hbm [shape: f32[4,8,128], index: 8, kind: output, shape index: {}]  }
   0x1   :  { %3766 = sst [smem:[#allocation20_spill]] %s3753_s1 }
   0x2   :  { %14 = dma.hbm_to_smem %s3752_s0, 64, %s3044_s27, [#allocation3] }
   0x3   :  { %3010 = dma.done.wait [#allocation3], 64 }
   0x4   :  { %3011 = vsyncadd [#allocation3], 4294967232 }
   0x5   :  { %16 = sfence }
   0x6   :  { %17 = vsyncpa [#allocation6], 0 }
   0x7   :  { %18 = vsyncpa [#allocation9], 0 }
   0x8   :  { %19 = vsyncpa [#allocation12], 0 }
   0x9   :  { %20 = vsyncpa [#allocation7], 0 }
   0xa   :  { %22 = vsyncpa [#allocation7 + $0x1], 0  ;;  %s3109_s30 = smov 0   ;;  %s3111_s9 = smov 0  }
   0xb   :  { %s3113_s10 = smov 0   ;;  %s3115_s11 = smov 0  }
   0xc LB: > { %s3130_s0 = sadd.s32 4294967295, %s3042_s11   ;;  %s2361_s12 = sadd.s32 4294967294, %s3042_s11   ;;  %s3042_s11 = sphi %s3115_s11, %s3789_s11   ;;  %s3038_s10 = sphi %s3113_s10, %s3788_s10   ;;  %s3034_s9 = sphi %s3111_s9, %s3787_s9   ;;  %s3030_s30 = sphi %s3109_s30, %s3786_s30  }
   0xd   : > { %s3134_s13 = sadd.s32 1, %s3042_s11   ;;  %s182_s14 = sadd.s32 1, %s3038_s10 }
   0xe   : > { %s179_s15 = ssub.s32 %s3042_s11, %s3134_s13  ;;  %p192_p0 = scmp.ne.s32.totalorder %s3038_s10, %s3034_s9 }
   0xf   : > { %p180_p1 = scmp.eq.s32.totalorder %s179_s15, 0  ;;  %p193_p2 = scmp.eq.s32.totalorder %s3130_s0, 3 }
  0x10   : > { %p198_p3 = scmp.ne.s32.totalorder %s3034_s9, %s3030_s30  ;;  %p199_p4 = scmp.eq.s32.totalorder %s2361_s12, 3 }
  0x11   : > { %s3145_s16 = scalar_select %p180_p1, %s3038_s10, %s182_s14  }
  0x12   : > { %p3147_p5 = por %p193_p2, %p192_p0  ;;  %p3151_p6 = por %p199_p4, %p198_p3 }
  0x13   : > { %p2362_p7 = scmp.ge.s32.totalorder %s3042_s11, 1  ;;  %p206_p8 = scmp.lt.s32.totalorder %s3042_s11, 5 }
  0x14   : > { %p3761_p9 = scmp.eq.s32.totalorder %s3130_s0, 0  ;;  %s3045_s20 = smov [#allocation8]  }
  0x15   : > { %p3158_p10 = pnand %p2362_p7, %p206_p8  ;;  %s231_s21 = sshll.u32 %s3045_s20, 4  ;;  %s232_s21 = int_to_ptr.vmem [resolvable:$true] %s231_s21 }
  0x16   : > { %s3046_s23 = smov [#allocation11]   ;;  %s3047_s25 = smov [#allocation5]  }
  0x17   : > { %p2520_p11 = pneg %p3158_p10  ;;  %s260_s24 = sshll.u32 %s3046_s23, 4  ;;  %s261_s24 = int_to_ptr.vmem [resolvable:$true] %s260_s24 }
  0x18   : > { %s218_s26 = sshll.u32 %s3047_s25, 4  ;;  %s2849_s28 = scalar_lea.vmem %s232_s21, 1024  ;;  %s219_s26 = int_to_ptr.vmem [resolvable:$true] %s218_s26 }
  0x19   : > { %p3166_p12 = pnand %p3761_p9, %p2520_p11  ;;  %p2850_p0 = scmp.ne.s32.totalorder %s232_s21, %s2849_s28 }
  0x1a   : > { %p2857_p3 = scmp.lt.s32.totalorder %s232_s21, %s232_s21  ;;  %p2858_p4 = scmp.lt.s32.totalorder %s2849_s28, %s2849_s28 }
  0x1b   : > { %p3172_p13 = pneg %p3166_p12 }
  0x1c   : > { %p2859_p7 = por %p2858_p4, %p2857_p3 }
  0x1d   : > { %p2852_p1 = pnand %p2850_p0, %p3172_p13 }
  0x1f   : > { %p2853_p2 = pneg %p2852_p1 }
  0x21   : > { %p2860_p8 = pnand %p2859_p7, %p2853_p2 }
  0x23   : > { %2863 = shalt.err (!%p2860_p8)
}
  0x24   : > { %s3762_s29 = smov 128   ;;  %s3763_s12 = smov 8  }
  0x25   : > { %2526 = dma.hbm_to_vmem [thread:$0]  (!%p3166_p12), %s3754_s2, 1024, %s232_s21, [#allocation9], %s3762_s29, %s3762_s29, %s3763_s12  }
  0x26   : > { %s2875_s20 = scalar_lea.vmem %s261_s24, 1024  ;;  %p2883_p3 = scmp.lt.s32.totalorder %s261_s24, %s261_s24 }
  0x27   : > { %p2876_p11 = scmp.ne.s32.totalorder %s261_s24, %s2875_s20  ;;  %p2884_p2 = scmp.lt.s32.totalorder %s2875_s20, %s2875_s20 }
  0x29   : > { %p2878_p0 = pnand %p2876_p11, %p3172_p13  ;;  %p2885_p4 = por %p2884_p2, %p2883_p3 }
  0x2b   : > { %p2879_p1 = pneg %p2878_p0 }
  0x2d   : > { %p2886_p7 = pnand %p2885_p4, %p2879_p1 }
  0x2f   : > { %2889 = shalt.err (!%p2886_p7)
}
  0x30   : > { %2532 = dma.hbm_to_vmem [thread:$0]  (!%p3166_p12), %s3757_s5, 1024, %s261_s24, [#allocation12], %s3762_s29, %s3762_s29, %s3763_s12  }
  0x31   : > { %s2901_s21 = scalar_lea.vmem %s219_s26, 1792  ;;  %p2909_p9 = scmp.lt.s32.totalorder %s219_s26, %s219_s26 }
  0x32   : > { %p2902_p8 = scmp.ne.s32.totalorder %s219_s26, %s2901_s21  ;;  %p2910_p3 = scmp.lt.s32.totalorder %s2901_s21, %s2901_s21 }
  0x34   : > { %p2904_p11 = pnand %p2902_p8, %p3172_p13  ;;  %p2911_p1 = por %p2910_p3, %p2909_p9 }
  0x36   : > { %p2905_p0 = pneg %p2904_p11 }
  0x38   : > { %p2912_p2 = pnand %p2911_p1, %p2905_p0 }
  0x3a   : > { %2915 = shalt.err (!%p2912_p2)
}
  0x3b   : > { %s3050_s28 = smov 256   ;;  %s3051_s14 = smov 16  }
  0x3c   : > { %s3772_s1 = sld [smem:[#allocation20_spill]]  ;;  %s3052_s24 = smov [#allocation10]  }
  0x3d   : > { %s244_s23 = sshll.u32 %s3052_s24, 4  ;;  %s3053_s25 = smov [#allocation13]   ;;  %s245_s23 = int_to_ptr.vmem [resolvable:$true] %s244_s23 }
  0x3e   : > { %s273_s29 = sshll.u32 %s3053_s25, 4  ;;  %s2927_s12 = scalar_lea.vmem %s245_s23, 1024  ;;  %s274_s29 = int_to_ptr.vmem [resolvable:$true] %s273_s29 }
  0x3f   : > { %p2928_p4 = scmp.ne.s32.totalorder %s245_s23, %s2927_s12  ;;  %p2935_p8 = scmp.lt.s32.totalorder %s245_s23, %s245_s23 }
  0x40   : > { %p2936_p11 = scmp.lt.s32.totalorder %s2927_s12, %s2927_s12 }
  0x41   : > { %p2930_p9 = pnand %p2928_p4, %p3172_p13 }
  0x42   : > { %2523 = dma.hbm_to_vmem [thread:$0]  (!%p3166_p12), %s3772_s1, 1792, %s219_s26, [#allocation6], %s3050_s28, %s3050_s28, %s3051_s14  }
  0x43   : > { %p2931_p7 = pneg %p2930_p9  ;;  %p2937_p0 = por %p2936_p11, %p2935_p8 }
  0x45   : > { %p2938_p3 = pnand %p2937_p0, %p2931_p7 }
  0x47   : > { %2941 = shalt.err (!%p2938_p3)
}
  0x48   : > { %s3773_s21 = smov 8   ;;  %s3774_s15 = smov 128  }
  0x49   : > { %2529 = dma.hbm_to_vmem [thread:$0]  (!%p3166_p12), %s3755_s3, 1024, %s245_s23, [#allocation9], %s3774_s15, %s3774_s15, %s3773_s21  }
  0x4a   : > { %s2953_s14 = scalar_lea.vmem %s274_s29, 512  ;;  %p2961_p9 = scmp.lt.s32.totalorder %s274_s29, %s274_s29 }
  0x4b   : > { %p2954_p1 = scmp.ne.s32.totalorder %s274_s29, %s2953_s14  ;;  %p2962_p8 = scmp.lt.s32.totalorder %s2953_s14, %s2953_s14 }
  0x4d   : > { %p2956_p2 = pnand %p2954_p1, %p3172_p13  ;;  %p2963_p7 = por %p2962_p8, %p2961_p9 }
  0x4f   : > { %p2957_p4 = pneg %p2956_p2 }
  0x51   : > { %p2964_p11 = pnand %p2963_p7, %p2957_p4 }
  0x53   : > { %2967 = shalt.err (!%p2964_p11)
}
  0x54   : > { %s3054_s12 = smov 64   ;;  %s3055_s20 = smov 4  }
  0x55   : > { %2535 = dma.hbm_to_vmem [thread:$0]  (!%p3166_p12), %s3758_s6, 512, %s274_s29, [#allocation12], %s3054_s12, %s3054_s12, %s3055_s20  }
  0x56   : > { %292 = sbr.rel (%p3158_p10) target bundleno = 9626 (0x259a), region = 48  ;;  %p3775_p0 = scmp.eq.s32.totalorder (!%p3158_p10), %s3130_s0, 0 }
  0x5b   : > { %3013 = dma.done.wait (%p3775_p0), [#allocation6], 1792   ;;  %p3776_p13 = pmov %p3775_p0 }
  0x5c   : > { %p3777_p3 = pmov %p3775_p0 }
  0x5d   : > { %3015 = vsyncadd (%p3776_p13), [#allocation6], 4294965504 }
  0x5e   : > { %3017 = dma.done.wait (%p3777_p3), [#allocation9], 2048   ;;  %p3778_p1 = pmov %p3775_p0 }
  0x5f   : > { %p3779_p2 = pmov %p3775_p0 }
  0x60   : > { %3019 = vsyncadd (%p3778_p1), [#allocation9], 4294965248 }
  0x61   : > { %3021 = dma.done.wait (%p3779_p2), [#allocation12], 1536   ;;  %p3780_p12 = pmov %p3775_p0 }
  0x62   : > { %v3056_v0 = vmov 0   ;;  %v3236_v1 = vld [vmem:[#allocation8 + $0x34] ss:$8 sps:$4 sm:$0xff]   ;;  %v3238_v2 = vld [vmem:[#allocation8 + $0x30] ss:$8 sps:$4 sm:$0xff]   ;;  %s3281_s19 = sshll.u32 %s3130_s0, 7  ;;  %v336_v9 = vlaneseq }
  0x63   : > { %3023 = vsyncadd (%p3780_p12), [#allocation12], 4294965760  ;;  %561 = vmatprep.mubr.bf16.mxu0 %v3056_v0  ;;  %666 = vmatprep.mubr.bf16.mxu1 %v3056_v0  ;;  %v3241_v3 = vld [vmem:[#allocation8 + $0x24] ss:$8 sps:$4 sm:$0xff]   ;;  %v3245_v4 = vld [vmem:[#allocation8 + $0x20] ss:$8 sps:$4 sm:$0xff]  }
  0x64   : > { %537 = vmatprep.subr.bf16.mxu0 %v3236_v1  ;;  %642 = vmatprep.subr.bf16.mxu1 %v3236_v1  ;;  %v3249_v5 = vld [vmem:[#allocation8 + $0x14] ss:$8 sps:$4 sm:$0xff]   ;;  %v3252_v6 = vld [vmem:[#allocation8 + $0x10] ss:$8 sps:$4 sm:$0xff]   ;;  %v3255_v7 = vld [vmem:[#allocation8 + $0x4] ss:$8 sps:$4 sm:$0xff]  }
  0x65   : > { %538 = vmatpush1.bf16.msra.mxu0 %v3238_v2  ;;  %643 = vmatpush1.bf16.msra.mxu1 %v3238_v2  ;;  %v3260_v8 = vld [vmem:[#allocation8] ss:$8 sps:$4 sm:$0xff]   ;;  %s442_s22 = sadd.s32 7, %s3281_s19  ;;  %s366_s27 = sld [smem:[#allocation4 + %s3281_s19]]  ;;  %v337_v10 = vand.u32 127, %v336_v9  ;;  %v463_v12 = vshrl.u32 %v336_v9, 7 }
  0x66   : > { %539 = vmatprep.subr.bf16.mxu0 %v3241_v3  ;;  %644 = vmatprep.subr.bf16.mxu1 %v3241_v3  ;;  %s443_s29 = sld [smem:[#allocation4 + %s442_s22]]  ;;  %s3764_s25 = smov 64   ;;  %vm602_vm2 = vcmask 253952   ;;  %vm604_vm3 = vcmask 516352   ;;  %vm525_vm4 = vcmask 523264   ;;  %vm1568_vm5 = vcmask 254977  }
  0x67   : > { %v338_v11 = vadd.s32 128, %v337_v10  ;;  %v3285_v13 = vsub.s32 1, %v463_v12  ;;  %v3302_v27 = vsub.s32 0, %v463_v12  ;;  %v343_v28 = vand.u32 63, %v337_v10  ;;  %s376_s22 = sadd.s32 1, %s3281_s19 }
  0x68   : > { %vm1570_vm6 = vcmask 517377   ;;  %vm1667_vm7 = vcmask 256002   ;;  %vm1669_vm8 = vcmask 518402   ;;  %vm1765_vm9 = vcmask 257027  }
  0x69   : > { %540 = vmatpush1.bf16.msra.mxu0 %v3245_v4  ;;  %645 = vmatpush1.bf16.msra.mxu1 %v3245_v4  ;;  %v350_v14 = vand.u32 63, %v338_v11  ;;  %vm3310_vm1 = vcmp.lt.s32.totalorder %v343_v28, 32  ;;  %vm1767_vm10 = vcmask 519427   ;;  %vm1859_vm11 = vcmask 258052  }
  0x6a   : > { %541 = vmatprep.subr.bf16.mxu0 %v3249_v5  ;;  %646 = vmatprep.subr.bf16.mxu1 %v3249_v5  ;;  %vm1861_vm12 = vcmask 520452   ;;  %vm1951_vm13 = vcmask 259077   ;;  %vm1953_vm14 = vcmask 521477   ;;  %vm2045_vm15 = vcmask 260102  }
  0x6b   : > { %s367_s23 = sshra.s32 %s366_s27, 3  ;;  %s370_s15 = sand.u32 7, %s366_s27  ;;  %vm3293_vm0 = vcmp.lt.s32.totalorder %v350_v14, 32 }
  0x6c   : > { %s444_s21 = sshra.s32 %s443_s29, 3  ;;  %s2473_s26 = sshll.u32 %s367_s23, 4 }
  0x6d   : > { %542 = vmatpush1.bf16.msra.mxu0 %v3252_v6  ;;  %647 = vmatpush1.bf16.msra.mxu1 %v3252_v6  ;;  %s447_s28 = sand.u32 7, %s443_s29  ;;  %s2480_s14 = sshll.u32 %s444_s21, 4 }
  0x6e   : > { %543 = vmatprep.subr.bf16.mxu0 %v3255_v7  ;;  %648 = vmatprep.subr.bf16.mxu1 %v3255_v7  ;;  %s373_s12 = sadd.s32 %s2473_s26, %s370_s15  ;;  %s450_s20 = sadd.s32 %s2480_s14, %s447_s28 }
  0x6f   : > { %s374_s0 = scalar_lea.vmem [#allocation5], %s373_s12  ;;  %s451_s24 = scalar_lea.vmem [#allocation5], %s450_s20 }
  0x70   : > { %v375_v15 = vld [vmem:[%s374_s0] ss:$8 sm:$0x3]  ;;  %s431_s27 = sadd.s32 6, %s3281_s19  ;;  %s377_s29 = sld [smem:[#allocation4 + %s376_s22]] }
  0x71   : > { %544 = vmatpush1.bf16.msra.mxu0 %v3260_v8  ;;  %649 = vmatpush1.bf16.msra.mxu1 %v3260_v8  ;;  %v452_v16 = vld [vmem:[%s451_s24] ss:$8 sm:$0x3]  ;;  %v3288_v17 = vrot.slane %v375_v15, %v3285_v13  ;;  %v3305_v29 = vrot.slane %v375_v15, %v3302_v27  ;;  %s432_s23 = sld [smem:[#allocation4 + %s431_s27]]  ;;  %s3785_s22 = smov 64  }
  0x72   : > { %745 = vmatprep.subr.bf16.mxu0 %v3236_v1  ;;  %848 = vmatprep.subr.bf16.mxu1 %v3236_v1  ;;  %v3291_v18 = vrot.slane %v452_v16, %v3285_v13  ;;  %v3308_v30 = vrot.slane %v452_v16, %v3302_v27  ;;  %s420_s27 = sadd.s32 5, %s3281_s19 }
  0x74   : > { %562 = vmatmul.mubr.bf16.vlgmr.msra.gmra.mxu0 %v3056_v0  ;;  %v484_v21 = vsel %vm3293_vm0, %v3288_v17, %v3291_v18  ;;  %v483_v32 = vsel %vm3310_vm1, %v3305_v29, %v3308_v30 }
  0x75   : > { %746 = vmatpush1.bf16.msra.mxu0 %v3238_v2  ;;  %769 = vmatprep.mubr.bf16.mxu0 %v3056_v0 }
  0x76   : > { %747 = vmatprep.subr.bf16.mxu0 %v3241_v3  ;;  %s378_s21 = sshra.s32 %s377_s29, 3  ;;  %s381_s26 = sand.u32 7, %s377_s29 }
  0x77   : > { %s433_s15 = sshra.s32 %s432_s23, 3  ;;  %s2474_s28 = sshll.u32 %s378_s21, 4 }
  0x78   : > { %s436_s14 = sand.u32 7, %s432_s23  ;;  %s2479_s12 = sshll.u32 %s433_s15, 4 }
  0x79   : > { %748 = vmatpush1.bf16.msra.mxu0 %v3245_v4  ;;  %s384_s20 = sadd.s32 %s2474_s28, %s381_s26  ;;  %s439_s0 = sadd.s32 %s2479_s12, %s436_s14 }
  0x7a   : > { %749 = vmatprep.subr.bf16.mxu0 %v3249_v5  ;;  %s385_s24 = scalar_lea.vmem [#allocation5], %s384_s20  ;;  %s421_s23 = sld [smem:[#allocation4 + %s420_s27]] }
  0x7b   : > { %v386_v51 = vld [vmem:[%s385_s24] ss:$8 sm:$0x3] }
  0x7c   : > { %v3338_v53 = vrot.slane %v386_v51, %v3285_v13  ;;  %v3349_v62 = vrot.slane %v386_v51, %v3302_v27 }
  0x7d   : > { %750 = vmatpush1.bf16.msra.mxu0 %v3252_v6 }
  0x7e   : > { %751 = vmatprep.subr.bf16.mxu0 %v3255_v7 }
  0x80   : > { %s422_s15 = sshra.s32 %s421_s23, 3  ;;  %s425_s14 = sand.u32 7, %s421_s23 }
  0x81   : > { %752 = vmatpush1.bf16.msra.mxu0 %v3260_v8  ;;  %s2478_s12 = sshll.u32 %s422_s15, 4 }
  0x82   : > { %929 = vmatprep.subr.bf16.mxu0 %v3236_v1 }
 0x134   : > { %v563_v20 = vpop.f32.mrf.mxu0 }
 0x135   : > { %v570_v33 = vadd.f32 %v563_v20, %v483_v32 }
 0x136   : > { %v565_v22 = vpop.f32.mrf.mxu0 }
 0x137   : > { %v571_v23 = vadd.f32 %v565_v22, %v484_v21  ;;  %v2400_v34 = vmul.f32 -1.442695, %v570_v33 }
 0x138   : > { %v567_v24 = vpop.f32.mrf.mxu0 }
 0x139   : > { %2638 = vtanh.f32 %v571_v23  ;;  %v2401_v44 = vmul.f32 -1.442695, %v571_v23 }
 0x13a   : > { %v568_v25 = vpop.f32.mrf.mxu0  ;;  %2640 = vpow2.f32 %v2400_v34 }
 0x146   : > { %v2639_v26 = vpop.eup %2638 }
 0x147   : > { %587 = vrot.lane.b32.xlu0 %v2639_v26, %s3764_s25  ;;  %v2641_v35 = vpop.eup %2640 }
 0x148   : > { %v578_v36 = vadd.f32 1.0, %v2641_v35 }
 0x14a   : > { %2642 = vrcp.f32 %v578_v36 }
 0x157   : > { %v2643_v37 = vpop.eup %2642 }
 0x158   : > { %v585_v40 = vmul.f32 0.0, %v2643_v37 }
 0x1b9   : > { %v588_v38 = vpop.permute.xlu0 %587 }
 0x1ba   : > { %v590_v39 = vmul.f32 %v2643_v37, %v588_v38 }
 0x1bc   : > { %592 = vrot.lane.b32.xlu0 %v590_v39, %s3764_s25 }
 0x22e   : > { %v593_v41 = vpop.permute.xlu0 %592 }
 0x22f   : > { %v3319_v42 = vadd.f32 %v593_v41, %v585_v40 }
 0x231   : > { %2644 = vtanh.f32 %v3319_v42 }
 0x232   : > { %2646 = vpow2.f32 %v2401_v44 }
 0x23e   : > { %v2645_v43 = vpop.eup %2644 }
 0x23f   : > { %598 = vrot.lane.b32.xlu1 %v2645_v43, %s3764_s25  ;;  %v2647_v45 = vpop.eup %2646  ;;  %s440_s25 = scalar_lea.vmem [#allocation5], %s439_s0  ;;  %s428_s0 = sadd.s32 %s2478_s12, %s425_s14 }
 0x240   : > { %v579_v46 = vadd.f32 1.0, %v2647_v45  ;;  %v441_v52 = vld [vmem:[%s440_s25] ss:$8 sm:$0x3]  ;;  %s387_s25 = sadd.s32 2, %s3281_s19  ;;  %s429_s1 = scalar_lea.vmem [#allocation5], %s428_s0 }
 0x241   : > { %v3341_v54 = vrot.slane %v441_v52, %v3285_v13  ;;  %v3352_v63 = vrot.slane %v441_v52, %v3302_v27  ;;  %s388_s29 = sld [smem:[#allocation4 + %s387_s25]]  ;;  %v430_v37 = vld [vmem:[%s429_s1] ss:$8 sm:$0x3]  ;;  %s398_s1 = sadd.s32 3, %s3281_s19 }
 0x242   : > { %2648 = vrcp.f32 %v579_v46  ;;  %v3382_v39 = vrot.slane %v430_v37, %v3285_v13  ;;  %s409_s25 = sadd.s32 4, %s3281_s19  ;;  %s399_s27 = sld [smem:[#allocation4 + %s398_s1]] }
 0x243   : > { %v629_v56 = vsel %vm3293_vm0, %v3338_v53, %v3341_v54  ;;  %v628_v9 = vsel %vm3310_vm1, %v3349_v62, %v3352_v63 }
 0x247   : > { %s389_s21 = sshra.s32 %s388_s29, 3  ;;  %s392_s26 = sand.u32 7, %s388_s29 }
 0x248   : > { %s2475_s28 = sshll.u32 %s389_s21, 4  ;;  %s410_s29 = sld [smem:[#allocation4 + %s409_s25]] }
 0x249   : > { %s395_s20 = sadd.s32 %s2475_s28, %s392_s26  ;;  %s400_s23 = sshra.s32 %s399_s27, 3 }
 0x24a   : > { %s396_s24 = scalar_lea.vmem [#allocation5], %s395_s20  ;;  %s403_s15 = sand.u32 7, %s399_s27 }
 0x24b   : > { %v397_v36 = vld [vmem:[%s396_s24] ss:$8 sm:$0x3]  ;;  %s2476_s26 = sshll.u32 %s400_s23, 4 }
 0x24c   : > { %v3379_v38 = vrot.slane %v397_v36, %v3285_v13  ;;  %s406_s12 = sadd.s32 %s2476_s26, %s403_s15 }
 0x24d   : > { %s407_s0 = scalar_lea.vmem [#allocation5], %s406_s12 }
 0x24e   : > { %v732_v41 = vsel %vm3293_vm0, %v3379_v38, %v3382_v39  ;;  %s411_s21 = sshra.s32 %s410_s29, 3  ;;  %s414_s28 = sand.u32 7, %s410_s29 }
 0x24f   : > { %v2649_v47 = vpop.eup %2648  ;;  %s2477_s14 = sshll.u32 %s411_s21, 4 }
 0x250   : > { %s417_s20 = sadd.s32 %s2477_s14, %s414_s28  ;;  %s3711_s14 = scalar_lea.hbm %s3760_s8, %s3281_s19 }
 0x251   : > { %s418_s24 = scalar_lea.vmem [#allocation5], %s417_s20 }
 0x2b1   : > { %v599_v48 = vpop.permute.xlu1 %598 }
 0x2b2   : > { %v601_v49 = vmul.f32 %v2649_v47, %v599_v48  ;;  %v3390_v47 = vrot.slane %v397_v36, %v3302_v27  ;;  %v3393_v48 = vrot.slane %v430_v37, %v3302_v27 }
 0x2b4   : > { %603 = vst.msk [vmem:[#allocation2] sm:$0x1] %vm602_vm2, %v601_v49  ;;  %v630_v50 = vpack.c.bf16 %v601_v49, %v601_v49 }
 0x2b5   : > { %605 = vst.msk [vmem:[#allocation2 + $0x7] sm:$0x1] %vm604_vm3, %v601_v49  ;;  %v731_v49 = vsel %vm3310_vm1, %v3390_v47, %v3393_v48 }
 0x2b6   : > { %2402 = vmatmul.mubr.msk.bf16.vlgmr.msra.gmra.mxu1 %vm525_vm4, %v630_v50 }
 0x2b7   : > { %849 = vmatpush1.bf16.msra.mxu1 %v3238_v2  ;;  %872 = vmatprep.mubr.bf16.mxu1 %v3056_v0 }
 0x2b8   : > { %850 = vmatprep.subr.bf16.mxu1 %v3241_v3 }
 0x2bb   : > { %851 = vmatpush1.bf16.msra.mxu1 %v3245_v4 }
 0x2bc   : > { %852 = vmatprep.subr.bf16.mxu1 %v3249_v5 }
 0x2bf   : > { %853 = vmatpush1.bf16.msra.mxu1 %v3252_v6 }
 0x2c0   : > { %854 = vmatprep.subr.bf16.mxu1 %v3255_v7 }
 0x2c3   : > { %855 = vmatpush1.bf16.msra.mxu1 %v3260_v8 }
 0x2c4   : > { %1010 = vmatprep.subr.bf16.mxu1 %v3236_v1 }
 0x376   : > { %v668_v55 = vpop.f32.mrf.mxu1 }
 0x377   : > { %v675_v10 = vadd.f32 %v668_v55, %v628_v9 }
 0x378   : > { %v670_v57 = vpop.f32.mrf.mxu1 }
 0x379   : > { %v676_v58 = vadd.f32 %v670_v57, %v629_v56  ;;  %v2403_v11 = vmul.f32 -1.442695, %v675_v10 }
 0x37a   : > { %v672_v59 = vpop.f32.mrf.mxu1 }
 0x37b   : > { %2650 = vtanh.f32 %v676_v58  ;;  %v2404_v25 = vmul.f32 -1.442695, %v676_v58 }
 0x37c   : > { %v673_v60 = vpop.f32.mrf.mxu1  ;;  %2652 = vpow2.f32 %v2403_v11 }
 0x388   : > { %v2651_v61 = vpop.eup %2650 }
 0x389   : > { %692 = vrot.lane.b32.xlu1 %v2651_v61, %s3785_s22  ;;  %v2653_v12 = vpop.eup %2652 }
 0x38a   : > { %v683_v14 = vadd.f32 1.0, %v2653_v12 }
 0x38c   : > { %2654 = vrcp.f32 %v683_v14 }
 0x399   : > { %v2655_v15 = vpop.eup %2654 }
 0x39a   : > { %v690_v21 = vmul.f32 %v2655_v15, %v3319_v42 }
 0x3fb   : > { %v693_v16 = vpop.permute.xlu1 %692 }
 0x3fc   : > { %v695_v20 = vmul.f32 %v2655_v15, %v693_v16 }
 0x3fe   : > { %697 = vrot.lane.b32.xlu0 %v695_v20, %s3785_s22 }
 0x470   : > { %v698_v22 = vpop.permute.xlu0 %697 }
 0x471   : > { %v3360_v23 = vadd.f32 %v698_v22, %v690_v21  ;;  %v408_v21 = vld [vmem:[%s407_s0] ss:$8 sm:$0x3]  ;;  %s3060_s0 = smov [#allocation14]  }
 0x472   : > { %v419_v22 = vld [vmem:[%s418_s24] ss:$8 sm:$0x3]  ;;  %s2972_s24 = sshll.u32 %s3060_s0, 4  ;;  %s2973_s24 = int_to_ptr.vmem [resolvable:$false] %s2972_s24 }
 0x473   : > { %2656 = vtanh.f32 %v3360_v23  ;;  %v827_v36 = vrot.slane %v419_v22, %v3302_v27  ;;  %s2974_s1 = scalar_lea.vmem %s2973_s24, 256 }
 0x474   : > { %2658 = vpow2.f32 %v2404_v25 }
 0x480   : > { %v2657_v24 = vpop.eup %2656 }
 0x481   : > { %703 = vrot.lane.b32.xlu1 %v2657_v24, %s3785_s22  ;;  %v2659_v26 = vpop.eup %2658 }
 0x482   : > { %v684_v28 = vadd.f32 1.0, %v2659_v26 }
 0x484   : > { %2660 = vrcp.f32 %v684_v28 }
 0x491   : > { %v2661_v32 = vpop.eup %2660 }
 0x4f3   : > { %v704_v33 = vpop.permute.xlu1 %703 }
 0x4f4   : > { %v706_v34 = vmul.f32 %v2661_v32, %v704_v33 }
 0x4f6   : > { %707 = vst.msk [vmem:[#allocation2 + $0x1] sm:$0x1] %vm602_vm2, %v706_v34  ;;  %v733_v35 = vpack.c.bf16 %v706_v34, %v706_v34 }
 0x4f7   : > { %708 = vst.msk [vmem:[#allocation2 + $0x6] sm:$0x1] %vm604_vm3, %v706_v34 }
 0x4f8   : > { %2405 = vmatmul.mubr.msk.bf16.vlgmr.msra.gmra.mxu0 %vm525_vm4, %v733_v35  ;;  %v816_v35 = vrot.slane %v408_v21, %v3302_v27 }
 0x4f9   : > { %930 = vmatpush1.bf16.msra.mxu0 %v3238_v2  ;;  %953 = vmatprep.mubr.bf16.mxu0 %v3056_v0 }
 0x4fa   : > { %931 = vmatprep.subr.bf16.mxu0 %v3241_v3  ;;  %v834_v37 = vsel %vm3310_vm1, %v816_v35, %v827_v36 }
 0x4fd   : > { %932 = vmatpush1.bf16.msra.mxu0 %v3245_v4 }
 0x4fe   : > { %933 = vmatprep.subr.bf16.mxu0 %v3249_v5 }
 0x501   : > { %934 = vmatpush1.bf16.msra.mxu0 %v3252_v6 }
 0x502   : > { %935 = vmatprep.subr.bf16.mxu0 %v3255_v7 }
 0x505   : > { %936 = vmatpush1.bf16.msra.mxu0 %v3260_v8 }
 0x506   : > { %1091 = vmatprep.subr.bf16.mxu0 %v3236_v1 }
 0x5b8   : > { %v771_v40 = vpop.f32.mrf.mxu0 }
 0x5b9   : > { %v778_v50 = vadd.f32 %v771_v40, %v731_v49 }
 0x5ba   : > { %v773_v42 = vpop.f32.mrf.mxu0 }
 0x5bb   : > { %v779_v43 = vadd.f32 %v773_v42, %v732_v41  ;;  %v2406_v51 = vmul.f32 -1.442695, %v778_v50 }
 0x5bc   : > { %v775_v44 = vpop.f32.mrf.mxu0 }
 0x5bd   : > { %2662 = vtanh.f32 %v779_v43  ;;  %v2407_v10 = vmul.f32 -1.442695, %v779_v43 }
 0x5be   : > { %v776_v45 = vpop.f32.mrf.mxu0  ;;  %2664 = vpow2.f32 %v2406_v51 }
 0x5ca   : > { %v2663_v46 = vpop.eup %2662 }
 0x5cb   : > { %795 = vrot.lane.b32.xlu0 %v2663_v46, %s3785_s22  ;;  %v2665_v52 = vpop.eup %2664 }
 0x5cc   : > { %v786_v55 = vadd.f32 1.0, %v2665_v52 }
 0x5ce   : > { %2666 = vrcp.f32 %v786_v55 }
 0x5db   : > { %v2667_v56 = vpop.eup %2666 }
 0x5dc   : > { %v793_v59 = vmul.f32 %v2667_v56, %v3360_v23  ;;  %v820_v23 = vrot.slane %v408_v21, %v3285_v13 }
 0x63d   : > { %v796_v57 = vpop.permute.xlu0 %795 }
 0x63e   : > { %v798_v58 = vmul.f32 %v2667_v56, %v796_v57 }
 0x640   : > { %800 = vrot.lane.b32.xlu1 %v798_v58, %s3785_s22 }
 0x6b2   : > { %v801_v60 = vpop.permute.xlu1 %800 }
 0x6b3   : > { %v3401_v61 = vadd.f32 %v801_v60, %v793_v59 }
 0x6b5   : > { %2668 = vtanh.f32 %v3401_v61 }
 0x6b6   : > { %2670 = vpow2.f32 %v2407_v10 }
 0x6c2   : > { %v2669_v9 = vpop.eup %2668 }
 0x6c3   : > { %806 = vrot.lane.b32.xlu0 %v2669_v9, %s3785_s22  ;;  %v2671_v11 = vpop.eup %2670 }
 0x6c4   : > { %v787_v12 = vadd.f32 1.0, %v2671_v11 }
 0x6c6   : > { %2672 = vrcp.f32 %v787_v12 }
 0x6d3   : > { %v2673_v14 = vpop.eup %2672 }
 0x735   : > { %v807_v15 = vpop.permute.xlu0 %806 }
 0x736   : > { %v809_v16 = vmul.f32 %v2673_v14, %v807_v15 }
 0x738   : > { %810 = vst.msk [vmem:[#allocation2 + $0x2] sm:$0x1] %vm602_vm2, %v809_v16  ;;  %v836_v20 = vpack.c.bf16 %v809_v16, %v809_v16 }
 0x739   : > { %811 = vst.msk [vmem:[#allocation2 + $0x5] sm:$0x1] %vm604_vm3, %v809_v16 }
 0x73a   : > { %2408 = vmatmul.mubr.msk.bf16.vlgmr.msra.gmra.mxu1 %vm525_vm4, %v836_v20  ;;  %v915_v20 = vsel %vm3310_vm1, %v827_v36, %v816_v35 }
 0x73b   : > { %1011 = vmatpush1.bf16.msra.mxu1 %v3238_v2  ;;  %1034 = vmatprep.mubr.bf16.mxu1 %v3056_v0 }
 0x73c   : > { %1012 = vmatprep.subr.bf16.mxu1 %v3241_v3 }
 0x73f   : > { %1013 = vmatpush1.bf16.msra.mxu1 %v3245_v4 }
 0x740   : > { %1014 = vmatprep.subr.bf16.mxu1 %v3249_v5 }
 0x743   : > { %1015 = vmatpush1.bf16.msra.mxu1 %v3252_v6 }
 0x744   : > { %1016 = vmatprep.subr.bf16.mxu1 %v3255_v7 }
 0x747   : > { %1017 = vmatpush1.bf16.msra.mxu1 %v3260_v8 }
 0x748   : > { %1172 = vmatprep.subr.bf16.mxu1 %v3236_v1  ;;  %v831_v1 = vrot.slane %v419_v22, %v3285_v13 }
 0x74a   : > { %v835_v25 = vsel %vm3293_vm0, %v820_v23, %v831_v1  ;;  %v916_v10 = vsel %vm3293_vm0, %v831_v1, %v820_v23 }
 0x7fa   : > { %v874_v24 = vpop.f32.mrf.mxu1 }
 0x7fb   : > { %v881_v40 = vadd.f32 %v874_v24, %v834_v37 }
 0x7fc   : > { %v876_v26 = vpop.f32.mrf.mxu1 }
 0x7fd   : > { %v882_v28 = vadd.f32 %v876_v26, %v835_v25  ;;  %v2409_v41 = vmul.f32 -1.442695, %v881_v40 }
 0x7fe   : > { %v878_v32 = vpop.f32.mrf.mxu1 }
 0x7ff   : > { %2674 = vtanh.f32 %v882_v28  ;;  %v2410_v55 = vmul.f32 -1.442695, %v882_v28 }
 0x800   : > { %v879_v33 = vpop.f32.mrf.mxu1  ;;  %2676 = vpow2.f32 %v2409_v41 }
 0x80c   : > { %v2675_v34 = vpop.eup %2674 }
 0x80d   : > { %898 = vrot.lane.b32.xlu1 %v2675_v34, %s3785_s22  ;;  %v2677_v42 = vpop.eup %2676 }
 0x80e   : > { %v889_v43 = vadd.f32 1.0, %v2677_v42 }
 0x810   : > { %2678 = vrcp.f32 %v889_v43 }
 0x81d   : > { %v2679_v44 = vpop.eup %2678 }
 0x81e   : > { %v896_v49 = vmul.f32 %v2679_v44, %v3401_v61 }
 0x87f   : > { %v899_v45 = vpop.permute.xlu1 %898 }
 0x880   : > { %v901_v46 = vmul.f32 %v2679_v44, %v899_v45 }
 0x882   : > { %903 = vrot.lane.b32.xlu0 %v901_v46, %s3785_s22 }
 0x8f4   : > { %v904_v50 = vpop.permute.xlu0 %903 }
 0x8f5   : > { %v906_v51 = vadd.f32 %v904_v50, %v896_v49 }
 0x8f7   : > { %2680 = vtanh.f32 %v906_v51 }
 0x8f8   : > { %2682 = vpow2.f32 %v2410_v55 }
 0x904   : > { %v2681_v52 = vpop.eup %2680 }
 0x905   : > { %909 = vrot.lane.b32.xlu1 %v2681_v52, %s3785_s22  ;;  %v2683_v56 = vpop.eup %2682 }
 0x906   : > { %v890_v57 = vadd.f32 1.0, %v2683_v56 }
 0x908   : > { %2684 = vrcp.f32 %v890_v57 }
 0x915   : > { %v2685_v58 = vpop.eup %2684 }
 0x977   : > { %v910_v59 = vpop.permute.xlu1 %909 }
 0x978   : > { %v912_v60 = vmul.f32 %v2685_v58, %v910_v59 }
 0x97a   : > { %913 = vst.msk [vmem:[#allocation2 + $0x3] sm:$0x1] %vm602_vm2, %v912_v60  ;;  %v917_v9 = vpack.c.bf16 %v912_v60, %v912_v60 }
 0x97b   : > { %914 = vst.msk [vmem:[#allocation2 + $0x4] sm:$0x1] %vm604_vm3, %v912_v60 }
 0x97c   : > { %2411 = vmatmul.mubr.msk.bf16.vlgmr.msra.gmra.mxu0 %vm525_vm4, %v917_v9 }
 0x97d   : > { %1092 = vmatpush1.bf16.msra.mxu0 %v3238_v2  ;;  %1115 = vmatprep.mubr.bf16.mxu0 %v3056_v0 }
 0x97e   : > { %1093 = vmatprep.subr.bf16.mxu0 %v3241_v3 }
 0x981   : > { %1094 = vmatpush1.bf16.msra.mxu0 %v3245_v4 }
 0x982   : > { %1095 = vmatprep.subr.bf16.mxu0 %v3249_v5 }
 0x985   : > { %1096 = vmatpush1.bf16.msra.mxu0 %v3252_v6 }
 0x986   : > { %1097 = vmatprep.subr.bf16.mxu0 %v3255_v7 }
 0x989   : > { %1098 = vmatpush1.bf16.msra.mxu0 %v3260_v8 }
 0xa3c   : > { %v955_v61 = vpop.f32.mrf.mxu0 }
 0xa3d   : > { %v962_v21 = vadd.f32 %v955_v61, %v915_v20 }
 0xa3e   : > { %v957_v11 = vpop.f32.mrf.mxu0 }
 0xa3f   : > { %v963_v12 = vadd.f32 %v957_v11, %v916_v10  ;;  %v2412_v22 = vmul.f32 -1.442695, %v962_v21  ;;  %v1078_v11 = vsel %vm3293_vm0, %v3341_v54, %v3338_v53  ;;  %v1077_v21 = vsel %vm3310_vm1, %v3352_v63, %v3349_v62 }
 0xa40   : > { %v959_v14 = vpop.f32.mrf.mxu0 }
 0xa41   : > { %2686 = vtanh.f32 %v963_v12  ;;  %v2413_v37 = vmul.f32 -1.442695, %v963_v12 }
 0xa42   : > { %v960_v15 = vpop.f32.mrf.mxu0  ;;  %2688 = vpow2.f32 %v2412_v22 }
 0xa4e   : > { %v2687_v16 = vpop.eup %2686 }
 0xa4f   : > { %979 = vrot.lane.b32.xlu0 %v2687_v16, %s3785_s22  ;;  %v2689_v24 = vpop.eup %2688 }
 0xa50   : > { %v970_v25 = vadd.f32 1.0, %v2689_v24 }
 0xa52   : > { %2690 = vrcp.f32 %v970_v25 }
 0xa5f   : > { %v2691_v26 = vpop.eup %2690 }
 0xa60   : > { %v977_v1 = vmul.f32 %v2691_v26, %v906_v51 }
 0xac1   : > { %v980_v28 = vpop.permute.xlu0 %979 }
 0xac2   : > { %v982_v23 = vmul.f32 %v2691_v26, %v980_v28 }
 0xac4   : > { %984 = vrot.lane.b32.xlu1 %v982_v23, %s3785_s22 }
 0xb36   : > { %v985_v32 = vpop.permute.xlu1 %984 }
 0xb37   : > { %v987_v33 = vadd.f32 %v985_v32, %v977_v1 }
 0xb39   : > { %2692 = vtanh.f32 %v987_v33 }
 0xb3a   : > { %2694 = vpow2.f32 %v2413_v37 }
 0xb46   : > { %v2693_v34 = vpop.eup %2692 }
 0xb47   : > { %990 = vrot.lane.b32.xlu0 %v2693_v34, %s3785_s22  ;;  %v2695_v35 = vpop.eup %2694 }
 0xb48   : > { %v971_v36 = vadd.f32 1.0, %v2695_v35 }
 0xb4a   : > { %2696 = vrcp.f32 %v971_v36 }
 0xb57   : > { %v2697_v40 = vpop.eup %2696 }
 0xbb9   : > { %v991_v41 = vpop.permute.xlu0 %990 }
 0xbba   : > { %v993_v42 = vmul.f32 %v2697_v40, %v991_v41 }
 0xbbc   : > { %994 = vst.msk [vmem:[#allocation2 + $0x4] sm:$0x1] %vm602_vm2, %v993_v42  ;;  %v998_v43 = vpack.c.bf16 %v993_v42, %v993_v42 }
 0xbbd   : > { %995 = vst.msk [vmem:[#allocation2 + $0x3] sm:$0x1] %vm604_vm3, %v993_v42  ;;  %v1159_v42 = vsel %vm3293_vm0, %v3291_v18, %v3288_v17 }
 0xbbe   : > { %2414 = vmatmul.mubr.msk.bf16.vlgmr.msra.gmra.mxu1 %vm525_vm4, %v998_v43 }
 0xbbf   : > { %1173 = vmatpush1.bf16.msra.mxu1 %v3238_v2  ;;  %1196 = vmatprep.mubr.bf16.mxu1 %v3056_v0  ;;  %v997_v2 = vsel %vm3293_vm0, %v3382_v39, %v3379_v38 }
 0xbc0   : > { %1174 = vmatprep.subr.bf16.mxu1 %v3241_v3 }
 0xbc3   : > { %1175 = vmatpush1.bf16.msra.mxu1 %v3245_v4 }
 0xbc4   : > { %1176 = vmatprep.subr.bf16.mxu1 %v3249_v5  ;;  %v996_v5 = vsel %vm3310_vm1, %v3393_v48, %v3390_v47 }
 0xbc7   : > { %1177 = vmatpush1.bf16.msra.mxu1 %v3252_v6 }
 0xbc8   : > { %1178 = vmatprep.subr.bf16.mxu1 %v3255_v7 }
 0xbcb   : > { %1179 = vmatpush1.bf16.msra.mxu1 %v3260_v8 }
 0xc7e   : > { %v1036_v44 = vpop.f32.mrf.mxu1 }
 0xc7f   : > { %v1043_v6 = vadd.f32 %v1036_v44, %v996_v5 }
 0xc80   : > { %v1038_v45 = vpop.f32.mrf.mxu1 }
 0xc81   : > { %v1044_v46 = vadd.f32 %v1038_v45, %v997_v2  ;;  %v2415_v7 = vmul.f32 -1.442695, %v1043_v6 }
 0xc82   : > { %v1040_v49 = vpop.f32.mrf.mxu1 }
 0xc83   : > { %2698 = vtanh.f32 %v1044_v46  ;;  %v2416_v58 = vmul.f32 -1.442695, %v1044_v46  ;;  %v1158_v49 = vsel %vm3310_vm1, %v3308_v30, %v3305_v29  ;;  %v3508_v29 = vld [vmem:[#allocation11 + $0x24] ss:$8 sps:$4 sm:$0xff]  }
 0xc84   : > { %v1041_v3 = vpop.f32.mrf.mxu1  ;;  %2700 = vpow2.f32 %v2415_v7 }
 0xc90   : > { %v2699_v4 = vpop.eup %2698 }
 0xc91   : > { %1060 = vrot.lane.b32.xlu1 %v2699_v4, %s3785_s22  ;;  %v2701_v8 = vpop.eup %2700 }
 0xc92   : > { %v1051_v50 = vadd.f32 1.0, %v2701_v8  ;;  %v3503_v8 = vld [vmem:[#allocation11 + $0x34] ss:$8 sps:$4 sm:$0xff]  }
 0xc93   : > { %1409 = vmatprep.subr.bf16.mxu1 %v3503_v8 }
 0xc94   : > { %2702 = vrcp.f32 %v1051_v50  ;;  %v2613_v50 = vld [vmem:[#allocation10 + $0x30] ss:$8 sps:$4 sm:$0xff]  }
 0xca1   : > { %v2703_v38 = vpop.eup %2702 }
 0xca2   : > { %v1058_v52 = vmul.f32 %v2703_v38, %v987_v33 }
 0xd03   : > { %v1061_v39 = vpop.permute.xlu1 %1060 }
 0xd04   : > { %v1063_v51 = vmul.f32 %v2703_v38, %v1061_v39  ;;  %v2615_v38 = vld [vmem:[#allocation10 + $0x34] ss:$8 sps:$4 sm:$0xff]   ;;  %v3505_v39 = vld [vmem:[#allocation11 + $0x30] ss:$8 sps:$4 sm:$0xff]  }
 0xd05   : > { %1312 = vmatprep.subr.bf16.mxu0 %v2615_v38 }
 0xd06   : > { %1065 = vrot.lane.b32.xlu0 %v1063_v51, %s3785_s22  ;;  %v1349_v51 = vld [vmem:[#allocation11 + $0x20] sm:$0xff] }
 0xd78   : > { %v1066_v55 = vpop.permute.xlu0 %1065 }
 0xd79   : > { %v1068_v56 = vadd.f32 %v1066_v55, %v1058_v52  ;;  %v1350_v52 = vld [vmem:[#allocation11 + $0x28] sm:$0xff] }
 0xd7b   : > { %2704 = vtanh.f32 %v1068_v56 }
 0xd7c   : > { %2706 = vpow2.f32 %v2416_v58  ;;  %v3512_v58 = vcombine.low %v1349_v51, %v1350_v52 }
 0xd88   : > { %v2705_v57 = vpop.eup %2704 }
 0xd89   : > { %1071 = vrot.lane.b32.xlu1 %v2705_v57, %s3785_s22  ;;  %v2707_v47 = vpop.eup %2706  ;;  %v2621_v57 = vld [vmem:[#allocation10 + $0x24] ss:$8 sps:$4 sm:$0xff]  }
 0xd8a   : > { %v1052_v48 = vadd.f32 1.0, %v2707_v47  ;;  %v2619_v47 = vld [vmem:[#allocation10 + $0x20] ss:$8 sps:$4 sm:$0xff]  }
 0xd8c   : > { %2708 = vrcp.f32 %v1052_v48  ;;  %v3515_v48 = vld [vmem:[#allocation11 + $0x14] ss:$8 sps:$4 sm:$0xff]  }
 0xd99   : > { %v2709_v59 = vpop.eup %2708 }
 0xdfb   : > { %v1072_v60 = vpop.permute.xlu1 %1071 }
 0xdfc   : > { %v1074_v9 = vmul.f32 %v2709_v59, %v1072_v60  ;;  %v2626_v59 = vld [vmem:[#allocation10 + $0x14] ss:$8 sps:$4 sm:$0xff]   ;;  %v3517_v60 = vld [vmem:[#allocation11 + $0x10] ss:$8 sps:$4 sm:$0xff]  }
 0xdfe   : > { %1075 = vst.msk [vmem:[#allocation2 + $0x5] sm:$0x1] %vm602_vm2, %v1074_v9  ;;  %v1079_v61 = vpack.c.bf16 %v1074_v9, %v1074_v9 }
 0xdff   : > { %1076 = vst.msk [vmem:[#allocation2 + $0x2] sm:$0x1] %vm604_vm3, %v1074_v9  ;;  %v2624_v9 = vld [vmem:[#allocation10 + $0x10] ss:$8 sps:$4 sm:$0xff]  }
 0xe00   : > { %2417 = vmatmul.mubr.msk.bf16.vlgmr.msra.gmra.mxu0 %vm525_vm4, %v1079_v61  ;;  %v3521_v61 = vld [vmem:[#allocation11 + $0x4] ss:$8 sps:$4 sm:$0xff]  }
 0xe01   : > { %1336 = vmatprep.mubr.bf16.mxu0 %v3056_v0  ;;  %1313 = vmatpush1.bf16.msra.mxu0 %v2613_v50 }
 0xe02   : > { %1314 = vmatprep.subr.bf16.mxu0 %v2621_v57 }
 0xe05   : > { %1315 = vmatpush1.bf16.msra.mxu0 %v2619_v47 }
 0xe06   : > { %1316 = vmatprep.subr.bf16.mxu0 %v2626_v59 }
 0xe09   : > { %1317 = vmatpush1.bf16.msra.mxu0 %v2624_v9 }
 0xec0   : > { %v1117_v10 = vpop.f32.mrf.mxu0 }
 0xec1   : > { %v1124_v22 = vadd.f32 %v1117_v10, %v1077_v21  ;;  %v2632_v10 = vld [vmem:[#allocation10 + $0x4] ss:$8 sps:$4 sm:$0xff]  }
 0xec2   : > { %v1119_v12 = vpop.f32.mrf.mxu0  ;;  %1318 = vmatprep.subr.bf16.mxu0 %v2632_v10 }
 0xec3   : > { %v1125_v14 = vadd.f32 %v1119_v12, %v1078_v11  ;;  %v2418_v24 = vmul.f32 -1.442695, %v1124_v22  ;;  %v3523_v11 = vld [vmem:[#allocation11] ss:$8 sps:$4 sm:$0xff]  }
 0xec4   : > { %v1121_v15 = vpop.f32.mrf.mxu0  ;;  %v2630_v12 = vld [vmem:[#allocation10] ss:$8 sps:$4 sm:$0xff]  }
 0xec5   : > { %2710 = vtanh.f32 %v1125_v14  ;;  %v2419_v34 = vmul.f32 -1.442695, %v1125_v14  ;;  %1319 = vmatpush1.bf16.msra.mxu0 %v2630_v12 }
 0xec6   : > { %v1122_v16 = vpop.f32.mrf.mxu0  ;;  %2712 = vpow2.f32 %v2418_v24  ;;  %1494 = vmatprep.subr.bf16.mxu0 %v3503_v8 }
 0xed2   : > { %v2711_v20 = vpop.eup %2710 }
 0xed3   : > { %1141 = vrot.lane.b32.xlu0 %v2711_v20, %s3785_s22  ;;  %v2713_v25 = vpop.eup %2712 }
 0xed4   : > { %v1132_v26 = vadd.f32 1.0, %v2713_v25 }
 0xed6   : > { %2714 = vrcp.f32 %v1132_v26 }
 0xee3   : > { %v2715_v53 = vpop.eup %2714 }
 0xee4   : > { %v1139_v23 = vmul.f32 %v2715_v53, %v1068_v56 }
 0xf45   : > { %v1142_v54 = vpop.permute.xlu0 %1141 }
 0xf46   : > { %v1144_v28 = vmul.f32 %v2715_v53, %v1142_v54 }
 0xf48   : > { %1146 = vrot.lane.b32.xlu1 %v1144_v28, %s3785_s22 }
 0xfba   : > { %v1147_v1 = vpop.permute.xlu1 %1146 }
 0xfbb   : > { %v1149_v32 = vadd.f32 %v1147_v1, %v1139_v23  ;;  %v1249_v1 = vld [vmem:[%s3756_s4] sm:$0x3] }
 0xfbd   : > { %2716 = vtanh.f32 %v1149_v32 }
 0xfbe   : > { %2718 = vpow2.f32 %v2419_v34 }
 0xfca   : > { %v2717_v33 = vpop.eup %2716 }
 0xfcb   : > { %1152 = vrot.lane.b32.xlu0 %v2717_v33, %s3785_s22  ;;  %v2719_v62 = vpop.eup %2718 }
 0xfcc   : > { %v1133_v63 = vadd.f32 1.0, %v2719_v62 }
 0xfce   : > { %2720 = vrcp.f32 %v1133_v63 }
 0xfdb   : > { %v2721_v37 = vpop.eup %2720 }
0x103d   : > { %v1153_v35 = vpop.permute.xlu0 %1152 }
0x103e   : > { %v1155_v36 = vmul.f32 %v2721_v37, %v1153_v35 }
0x1040   : > { %1156 = vst.msk [vmem:[#allocation2 + $0x6] sm:$0x1] %vm602_vm2, %v1155_v36  ;;  %v1160_v40 = vpack.c.bf16 %v1155_v36, %v1155_v36 }
0x1041   : > { %1157 = vst.msk [vmem:[#allocation2 + $0x1] sm:$0x1] %vm604_vm3, %v1155_v36 }
0x1042   : > { %2420 = vmatmul.mubr.msk.bf16.vlgmr.msra.gmra.mxu1 %vm525_vm4, %v1160_v40 }
0x1043   : > { %1433 = vmatprep.mubr.bf16.mxu1 %v3056_v0  ;;  %1410 = vmatpush1.bf16.msra.mxu1 %v3505_v39 }
0x1044   : > { %1411 = vmatprep.subr.bf16.mxu1 %v3508_v29 }
0x1047   : > { %1412 = vmatpush1.bf16.msra.mxu1 %v3512_v58 }
0x1048   : > { %1413 = vmatprep.subr.bf16.mxu1 %v3515_v48 }
0x104b   : > { %1414 = vmatpush1.bf16.msra.mxu1 %v3517_v60 }
0x104c   : > { %1415 = vmatprep.subr.bf16.mxu1 %v3521_v61 }
0x104f   : > { %1416 = vmatpush1.bf16.msra.mxu1 %v3523_v11 }
0x1050   : > { %1593 = vmatprep.subr.bf16.mxu1 %v3503_v8 }
0x1052   : > { %1434 = vmatmul.mubr.bf16.vlgmr.msra.gmra.mxu1 %v3056_v0 }
0x1053   : > { %1594 = vmatpush1.bf16.msra.mxu1 %v3505_v39  ;;  %1617 = vmatprep.mubr.bf16.mxu1 %v3056_v0 }
0x1054   : > { %1595 = vmatprep.subr.bf16.mxu1 %v3508_v29 }
0x1057   : > { %1596 = vmatpush1.bf16.msra.mxu1 %v3512_v58 }
0x1058   : > { %1597 = vmatprep.subr.bf16.mxu1 %v3515_v48 }
0x105b   : > { %1598 = vmatpush1.bf16.msra.mxu1 %v3517_v60 }
0x105c   : > { %1599 = vmatprep.subr.bf16.mxu1 %v3521_v61 }
0x105f   : > { %1600 = vmatpush1.bf16.msra.mxu1 %v3523_v11 }
0x1060   : > { %1785 = vmatprep.subr.bf16.mxu1 %v3503_v8 }
0x1102   : > { %v1198_v41 = vpop.f32.mrf.mxu1 }
0x1103   : > { %v1205_v3 = vadd.f32 %v1198_v41, %v1158_v49 }
0x1104   : > { %v1200_v43 = vpop.f32.mrf.mxu1 }
0x1105   : > { %v3494_v44 = vadd.f32 %v1200_v43, %v1159_v42  ;;  %v2421_v4 = vmul.f32 -1.442695, %v1205_v3 }
0x1106   : > { %v1202_v2 = vpop.f32.mrf.mxu1 }
0x1107   : > { %2722 = vtanh.f32 %v3494_v44  ;;  %v2422_v15 = vmul.f32 -1.442695, %v3494_v44 }
0x1108   : > { %v1203_v45 = vpop.f32.mrf.mxu1  ;;  %2724 = vpow2.f32 %v2421_v4 }
0x1112   : > { %v1435_v53 = vpop.f32.mrf.mxu1 }
0x1114   : > { %v2723_v46 = vpop.eup %2722  ;;  %v1437_v54 = vpop.f32.mrf.mxu1 }
0x1115   : > { %1222 = vrot.lane.b32.xlu1 %v2723_v46, %s3785_s22  ;;  %v2725_v5 = vpop.eup %2724 }
0x1116   : > { %v1213_v17 = vadd.f32 1.0, %v2725_v5  ;;  %v1439_v28 = vpop.f32.mrf.mxu1 }
0x1118   : > { %2726 = vrcp.f32 %v1213_v17  ;;  %v1440_v23 = vpop.f32.mrf.mxu1 }
0x1125   : > { %v2727_v18 = vpop.eup %2726 }
0x1126   : > { %v1220_v30 = vmul.f32 %v2727_v18, %v1149_v32  ;;  %v1258_v32 = vrot.slane %v1249_v1, %v3285_v13  ;;  %v1254_v13 = vrot.slane %v1249_v1, %v3302_v27 }
0x1187   : > { %v1223_v6 = vpop.permute.xlu1 %1222 }
0x1188   : > { %v1225_v7 = vmul.f32 %v2727_v18, %v1223_v6 }
0x118a   : > { %1227 = vrot.lane.b32.xlu0 %v1225_v7, %s3785_s22 }
0x11fc   : > { %v1228_v55 = vpop.permute.xlu0 %1227 }
0x11fd   : > { %v1230_v56 = vadd.f32 %v1228_v55, %v1220_v30 }
0x11ff   : > { %2728 = vtanh.f32 %v1230_v56 }
0x1200   : > { %2730 = vpow2.f32 %v2422_v15 }
0x120c   : > { %v2729_v14 = vpop.eup %2728 }
0x120d   : > { %1233 = vrot.lane.b32.xlu1 %v2729_v14, %s3785_s22  ;;  %v2731_v16 = vpop.eup %2730 }
0x120e   : > { %v1214_v20 = vadd.f32 1.0, %v2731_v16 }
0x1210   : > { %2732 = vrcp.f32 %v1214_v20 }
0x121d   : > { %v2733_v21 = vpop.eup %2732 }
0x127f   : > { %v1234_v22 = vpop.permute.xlu1 %1233 }
0x1280   : > { %v1236_v24 = vmul.f32 %v2733_v21, %v1234_v22 }
0x1282   : > { %1237 = vst.msk [vmem:[#allocation2 + $0x7] sm:$0x1] %vm602_vm2, %v1236_v24 }
0x1283   : > { %1238 = vst.msk [vmem:[#allocation2] sm:$0x1] %vm604_vm3, %v1236_v24 }
0x128a   : > { %v1239_v25 = vld [vmem:[#allocation2] sm:$0xff] }
0x128b   : > { %v1240_v26 = vpack.c.bf16 %v1239_v25, %v1239_v25 }
0x128d   : > { %2431 = vmatmul.mubr.msk.bf16.vlgmr.msra.gmra.mxu0 %vm525_vm4, %v1240_v26 }
0x128e   : > { %1495 = vmatpush1.bf16.msra.mxu0 %v3505_v39  ;;  %1518 = vmatprep.mubr.bf16.mxu0 %v3056_v0 }
0x128f   : > { %1496 = vmatprep.subr.bf16.mxu0 %v3508_v29 }
0x1292   : > { %1497 = vmatpush1.bf16.msra.mxu0 %v3512_v58 }
0x1293   : > { %1498 = vmatprep.subr.bf16.mxu0 %v3515_v48 }
0x1296   : > { %1499 = vmatpush1.bf16.msra.mxu0 %v3517_v60 }
0x1297   : > { %1500 = vmatprep.subr.bf16.mxu0 %v3521_v61 }
0x129a   : > { %1501 = vmatpush1.bf16.msra.mxu0 %v3523_v11 }
0x129b   : > { %1691 = vmatprep.subr.bf16.mxu0 %v3503_v8 }
0x134d   : > { %v1338_v33 = vpop.f32.mrf.mxu0 }
0x134e   : > { %v3568_v42 = vadd.f32 %v1338_v33, %v1254_v13 }
0x134f   : > { %v1340_v34 = vpop.f32.mrf.mxu0 }
0x1350   : > { %v3557_v62 = vadd.f32 %v1340_v34, %v1258_v32  ;;  %v1355_v43 = vrot.slane %v3568_v42, 7  ;;  %v1476_v16 = vrot.slane %v3568_v42, 5 }
0x1351   : > { %v1342_v63 = vpop.f32.mrf.mxu0 }
0x1352   : > { %v1356_v37 = vrot.slane %v3557_v62, 7  ;;  %v3574_v44 = vsel %vm3310_vm1, %v3568_v42, %v1355_v43  ;;  %v1477_v57 = vrot.slane %v3557_v62, 5  ;;  %v3603_v21 = vsel %vm3310_vm1, %v3568_v42, %v1476_v16 }
0x1353   : > { %v1343_v35 = vpop.f32.mrf.mxu0  ;;  %v1442_v2 = vadd.f32 %v1435_v53, %v3574_v44 }
0x1354   : > { %v3563_v36 = vsel %vm3293_vm0, %v3557_v62, %v1356_v37  ;;  %v3595_v9 = vsel %vm3293_vm0, %v3557_v62, %v1477_v57 }
0x1355   : > { %v1443_v40 = vadd.f32 %v1437_v54, %v3563_v36  ;;  %v2440_v45 = vmul.f32 -1.442695, %v1442_v2 }
0x1357   : > { %2734 = vtanh.f32 %v1443_v40  ;;  %v2441_v7 = vmul.f32 -1.442695, %v1443_v40 }
0x1358   : > { %2736 = vpow2.f32 %v2440_v45 }
0x1364   : > { %v2735_v41 = vpop.eup %2734 }
0x1365   : > { %1459 = vrot.lane.b32.xlu0 %v2735_v41, %s3785_s22  ;;  %v2737_v46 = vpop.eup %2736 }
0x1366   : > { %v1450_v49 = vadd.f32 1.0, %v2737_v46  ;;  %v1573_v46 = vrot.slane %v3557_v62, 3 }
0x1368   : > { %2738 = vrcp.f32 %v1450_v49 }
0x1375   : > { %v2739_v3 = vpop.eup %2738 }
0x1376   : > { %v1457_v27 = vmul.f32 0.0, %v2739_v3 }
0x13d7   : > { %v1460_v4 = vpop.permute.xlu0 %1459 }
0x13d8   : > { %v1462_v5 = vmul.f32 %v2739_v3, %v1460_v4  ;;  %v3622_v4 = vsel %vm3293_vm0, %v3557_v62, %v1573_v46 }
0x13da   : > { %1464 = vrot.lane.b32.xlu1 %v1462_v5, %s3785_s22 }
0x144c   : > { %v1465_v17 = vpop.permute.xlu1 %1464 }
0x144d   : > { %v1467_v18 = vadd.f32 %v1465_v17, %v1457_v27 }
0x144f   : > { %2740 = vtanh.f32 %v1467_v18  ;;  %v1549_v23 = vrot.slane %v1467_v18, 7 }
0x1450   : > { %2742 = vpow2.f32 %v2441_v7 }
0x145c   : > { %v2741_v6 = vpop.eup %2740 }
0x145d   : > { %1470 = vrot.lane.b32.xlu0 %v2741_v6, %s3785_s22  ;;  %v2743_v50 = vpop.eup %2742  ;;  %v1572_v6 = vrot.slane %v3568_v42, 3 }
0x145e   : > { %v1451_v38 = vadd.f32 1.0, %v2743_v50 }
0x145f   : > { %v3630_v50 = vsel %vm3310_vm1, %v3568_v42, %v1572_v6 }
0x1460   : > { %2744 = vrcp.f32 %v1451_v38 }
0x146d   : > { %v2745_v30 = vpop.eup %2744 }
0x14cf   : > { %v1471_v51 = vpop.permute.xlu0 %1470 }
0x14d0   : > { %v1473_v52 = vmul.f32 %v2745_v30, %v1471_v51 }
0x14d2   : > { %1474 = vst.msk [vmem:[#allocation2] sm:$0x1] %vm602_vm2, %v1473_v52  ;;  %v1482_v55 = vpack.c.bf16 %v1473_v52, %v1473_v52  ;;  %vm2137_vm2 = vcmask 261127  }
0x14d3   : > { %1475 = vst.msk [vmem:[#allocation2 + $0x7] sm:$0x1] %vm604_vm3, %v1473_v52  ;;  %vm2139_vm3 = vcmask 523527  }
0x14d4   : > { %2442 = vmatmul.mubr.msk.bf16.vlgmr.msra.gmra.mxu0 %vm525_vm4, %v1482_v55 }
0x14d5   : > { %1692 = vmatpush1.bf16.msra.mxu0 %v3505_v39  ;;  %1715 = vmatprep.mubr.bf16.mxu0 %v3056_v0 }
0x14d6   : > { %1693 = vmatprep.subr.bf16.mxu0 %v3508_v29 }
0x14d9   : > { %1694 = vmatpush1.bf16.msra.mxu0 %v3512_v58 }
0x14da   : > { %1695 = vmatprep.subr.bf16.mxu0 %v3515_v48 }
0x14dd   : > { %1696 = vmatpush1.bf16.msra.mxu0 %v3517_v60 }
0x14de   : > { %1697 = vmatprep.subr.bf16.mxu0 %v3521_v61 }
0x14e1   : > { %1698 = vmatpush1.bf16.msra.mxu0 %v3523_v11 }
0x14e2   : > { %1877 = vmatprep.subr.bf16.mxu0 %v3503_v8 }
0x1594   : > { %v1520_v56 = vpop.f32.mrf.mxu0 }
0x1595   : > { %v1529_v20 = vrot.slane %v1520_v56, 7 }
0x1596   : > { %v1522_v47 = vpop.f32.mrf.mxu0 }
0x1597   : > { %v1530_v59 = vrot.slane %v1522_v47, 7  ;;  %v1533_v22 = vadd.f32 %v1529_v20, %v3603_v21 }
0x1598   : > { %v1524_v10 = vpop.f32.mrf.mxu0 }
0x1599   : > { %v1534_v12 = vadd.f32 %v1530_v59, %v3595_v9  ;;  %v2443_v24 = vmul.f32 -1.442695, %v1533_v22 }
0x159a   : > { %v1525_v14 = vpop.f32.mrf.mxu0 }
0x159b   : > { %2746 = vtanh.f32 %v1534_v12  ;;  %v2444_v63 = vmul.f32 -1.442695, %v1534_v12 }
0x159c   : > { %2748 = vpow2.f32 %v2443_v24 }
0x15a8   : > { %v2747_v15 = vpop.eup %2746 }
0x15a9   : > { %1553 = vrot.lane.b32.xlu1 %v2747_v15, %s3785_s22  ;;  %v2749_v25 = vpop.eup %2748 }
0x15aa   : > { %v1541_v26 = vadd.f32 1.0, %v2749_v25 }
0x15ac   : > { %2750 = vrcp.f32 %v1541_v26 }
0x15b9   : > { %v2751_v53 = vpop.eup %2750 }
0x15ba   : > { %v1551_v1 = vmul.f32 %v2751_v53, %v1549_v23 }
0x161b   : > { %v1554_v54 = vpop.permute.xlu1 %1553 }
0x161c   : > { %v1556_v28 = vmul.f32 %v2751_v53, %v1554_v54 }
0x161e   : > { %1558 = vrot.lane.b32.xlu0 %v1556_v28, %s3785_s22  ;;  %v1672_v28 = vrot.slane %v3557_v62, 1 }
0x1690   : > { %v1559_v32 = vpop.permute.xlu0 %1558 }
0x1691   : > { %v1561_v33 = vadd.f32 %v1559_v32, %v1551_v1  ;;  %v3649_v32 = vsel %vm3293_vm0, %v3557_v62, %v1672_v28  ;;  %vm2047_vm0 = vcmask 522502  }
0x1693   : > { %2752 = vtanh.f32 %v1561_v33  ;;  %v1648_v47 = vrot.slane %v1561_v33, 7 }
0x1694   : > { %2754 = vpow2.f32 %v2444_v63 }
0x16a0   : > { %v2753_v34 = vpop.eup %2752 }
0x16a1   : > { %1564 = vrot.lane.b32.xlu1 %v2753_v34, %s3785_s22  ;;  %v2755_v37 = vpop.eup %2754 }
0x16a2   : > { %v1542_v35 = vadd.f32 1.0, %v2755_v37 }
0x16a4   : > { %2756 = vrcp.f32 %v1542_v35 }
0x16b1   : > { %v2757_v40 = vpop.eup %2756 }
0x1713   : > { %v1565_v41 = vpop.permute.xlu1 %1564 }
0x1714   : > { %v1567_v13 = vmul.f32 %v2757_v40, %v1565_v41 }
0x1716   : > { %1569 = vst.msk [vmem:[#allocation2] sm:$0x2] %vm1568_vm5, %v1567_v13  ;;  %v1578_v43 = vpack.c.bf16 %v1567_v13, %v1567_v13 }
0x1717   : > { %1571 = vst.msk [vmem:[#allocation2 + $0x5] sm:$0x2] %vm1570_vm6, %v1567_v13 }
0x1718   : > { %v1580_v2 = vshrl.u32 %v1578_v43, 16 }
0x171a   : > { %2445 = vmatmul.mubr.msk.bf16.vlgmr.msra.gmra.mxu1 %vm525_vm4, %v1580_v2 }
0x171b   : > { %1786 = vmatpush1.bf16.msra.mxu1 %v3505_v39  ;;  %1809 = vmatprep.mubr.bf16.mxu1 %v3056_v0 }
0x171c   : > { %1787 = vmatprep.subr.bf16.mxu1 %v3508_v29 }
0x171f   : > { %1788 = vmatpush1.bf16.msra.mxu1 %v3512_v58 }
0x1720   : > { %1789 = vmatprep.subr.bf16.mxu1 %v3515_v48 }
0x1723   : > { %1790 = vmatpush1.bf16.msra.mxu1 %v3517_v60 }
0x1724   : > { %1791 = vmatprep.subr.bf16.mxu1 %v3521_v61 }
0x1727   : > { %1792 = vmatpush1.bf16.msra.mxu1 %v3523_v11 }
0x1728   : > { %1971 = vmatprep.subr.bf16.mxu1 %v3503_v8 }
0x17da   : > { %v1619_v45 = vpop.f32.mrf.mxu1 }
0x17db   : > { %v1628_v7 = vrot.slane %v1619_v45, 6 }
0x17dc   : > { %v1621_v49 = vpop.f32.mrf.mxu1 }
0x17dd   : > { %v1629_v3 = vrot.slane %v1621_v49, 6  ;;  %v1632_v38 = vadd.f32 %v1628_v7, %v3630_v50 }
0x17de   : > { %v1623_v5 = vpop.f32.mrf.mxu1 }
0x17df   : > { %v1633_v27 = vadd.f32 %v1629_v3, %v3622_v4  ;;  %v2446_v30 = vmul.f32 -1.442695, %v1632_v38 }
0x17e0   : > { %v1624_v17 = vpop.f32.mrf.mxu1 }
0x17e1   : > { %2758 = vtanh.f32 %v1633_v27  ;;  %v2447_v15 = vmul.f32 -1.442695, %v1633_v27 }
0x17e2   : > { %2760 = vpow2.f32 %v2446_v30 }
0x17ee   : > { %v2759_v18 = vpop.eup %2758 }
0x17ef   : > { %1652 = vrot.lane.b32.xlu0 %v2759_v18, %s3785_s22  ;;  %v2761_v51 = vpop.eup %2760 }
0x17f0   : > { %v1640_v52 = vadd.f32 1.0, %v2761_v51 }
0x17f2   : > { %2762 = vrcp.f32 %v1640_v52 }
0x17ff   : > { %v2763_v55 = vpop.eup %2762 }
0x1800   : > { %v1650_v59 = vmul.f32 %v2763_v55, %v1648_v47 }
0x1861   : > { %v1653_v56 = vpop.permute.xlu0 %1652 }
0x1862   : > { %v1655_v57 = vmul.f32 %v2763_v55, %v1653_v56 }
0x1864   : > { %1657 = vrot.lane.b32.xlu1 %v1655_v57, %s3785_s22 }
0x18d6   : > { %v1658_v10 = vpop.permute.xlu1 %1657 }
0x18d7   : > { %v1660_v12 = vadd.f32 %v1658_v10, %v1650_v59 }
0x18d9   : > { %2764 = vtanh.f32 %v1660_v12  ;;  %v1746_v46 = vrot.slane %v1660_v12, 7 }
0x18da   : > { %2766 = vpow2.f32 %v2447_v15 }
0x18e6   : > { %v2765_v14 = vpop.eup %2764 }
0x18e7   : > { %1663 = vrot.lane.b32.xlu0 %v2765_v14, %s3785_s22  ;;  %v2767_v16 = vpop.eup %2766 }
0x18e8   : > { %v1641_v20 = vadd.f32 1.0, %v2767_v16 }
0x18ea   : > { %2768 = vrcp.f32 %v1641_v20 }
0x18f7   : > { %v2769_v22 = vpop.eup %2768 }
0x1959   : > { %v1664_v24 = vpop.permute.xlu0 %1663 }
0x195a   : > { %v1666_v25 = vmul.f32 %v2769_v22, %v1664_v24 }
0x195c   : > { %1668 = vst.msk [vmem:[#allocation2] sm:$0x4] %vm1667_vm7, %v1666_v25  ;;  %v1677_v26 = vpack.c.bf16 %v1666_v25, %v1666_v25 }
0x195d   : > { %1670 = vst.msk [vmem:[#allocation2 + $0x3] sm:$0x4] %vm1669_vm8, %v1666_v25 }
0x195e   : > { %v1679_v53 = vrot.slane %v1677_v26, 1 }
0x1960   : > { %2448 = vmatmul.mubr.msk.bf16.vlgmr.msra.gmra.mxu0 %vm525_vm4, %v1679_v53 }
0x1961   : > { %1878 = vmatpush1.bf16.msra.mxu0 %v3505_v39  ;;  %1901 = vmatprep.mubr.bf16.mxu0 %v3056_v0 }
0x1962   : > { %1879 = vmatprep.subr.bf16.mxu0 %v3508_v29 }
0x1965   : > { %1880 = vmatpush1.bf16.msra.mxu0 %v3512_v58 }
0x1966   : > { %1881 = vmatprep.subr.bf16.mxu0 %v3515_v48 }
0x1969   : > { %1882 = vmatpush1.bf16.msra.mxu0 %v3517_v60 }
0x196a   : > { %1883 = vmatprep.subr.bf16.mxu0 %v3521_v61 }
0x196d   : > { %1884 = vmatpush1.bf16.msra.mxu0 %v3523_v11 }
0x196e   : > { %2063 = vmatprep.subr.bf16.mxu0 %v3503_v8  ;;  %v1671_v8 = vrot.slane %v3568_v42, 1 }
0x1970   : > { %v3657_v40 = vsel %vm3310_vm1, %v3568_v42, %v1671_v8  ;;  %vm3059_vm1 = vmmov 0  }
0x1a20   : > { %v1717_v54 = vpop.f32.mrf.mxu0 }
0x1a21   : > { %v1726_v35 = vrot.slane %v1717_v54, 5 }
0x1a22   : > { %v1719_v23 = vpop.f32.mrf.mxu0 }
0x1a23   : > { %v1727_v1 = vrot.slane %v1719_v23, 5  ;;  %v1730_v19 = vadd.f32 %v1726_v35, %v3657_v40 }
0x1a24   : > { %v1721_v33 = vpop.f32.mrf.mxu0 }
0x1a25   : > { %v1731_v34 = vadd.f32 %v1727_v1, %v3649_v32  ;;  %v2449_v62 = vmul.f32 -1.442695, %v1730_v19 }
0x1a26   : > { %v1722_v63 = vpop.f32.mrf.mxu0 }
0x1a27   : > { %2770 = vtanh.f32 %v1731_v34  ;;  %v2450_v42 = vmul.f32 -1.442695, %v1731_v34 }
0x1a28   : > { %2772 = vpow2.f32 %v2449_v62 }
0x1a34   : > { %v2771_v37 = vpop.eup %2770 }
0x1a35   : > { %1750 = vrot.lane.b32.xlu1 %v2771_v37, %s3785_s22  ;;  %v2773_v41 = vpop.eup %2772 }
0x1a36   : > { %v1738_v13 = vadd.f32 1.0, %v2773_v41 }
0x1a38   : > { %2774 = vrcp.f32 %v1738_v13 }
0x1a45   : > { %v2775_v43 = vpop.eup %2774 }
0x1a46   : > { %v1748_v49 = vmul.f32 %v2775_v43, %v1746_v46 }
0x1aa7   : > { %v1751_v2 = vpop.permute.xlu1 %1750 }
0x1aa8   : > { %v1753_v45 = vmul.f32 %v2775_v43, %v1751_v2 }
0x1aaa   : > { %1755 = vrot.lane.b32.xlu0 %v1753_v45, %s3785_s22 }
0x1b1c   : > { %v1756_v3 = vpop.permute.xlu0 %1755 }
0x1b1d   : > { %v1758_v5 = vadd.f32 %v1756_v3, %v1748_v49 }
0x1b1f   : > { %2776 = vtanh.f32 %v1758_v5  ;;  %v1840_v26 = vrot.slane %v1758_v5, 7 }
0x1b20   : > { %2778 = vpow2.f32 %v2450_v42 }
0x1b2c   : > { %v2777_v31 = vpop.eup %2776 }
0x1b2d   : > { %1761 = vrot.lane.b32.xlu1 %v2777_v31, %s3785_s22  ;;  %v2779_v27 = vpop.eup %2778 }
0x1b2e   : > { %v1739_v17 = vadd.f32 1.0, %v2779_v27 }
0x1b30   : > { %2780 = vrcp.f32 %v1739_v17 }
0x1b3d   : > { %v2781_v18 = vpop.eup %2780 }
0x1b9f   : > { %v1762_v6 = vpop.permute.xlu1 %1761 }
0x1ba0   : > { %v1764_v7 = vmul.f32 %v2781_v18, %v1762_v6 }
0x1ba2   : > { %1766 = vst.msk [vmem:[#allocation2] sm:$0x8] %vm1765_vm9, %v1764_v7  ;;  %v1769_v38 = vpack.c.bf16 %v1764_v7, %v1764_v7 }
0x1ba3   : > { %1768 = vst.msk [vmem:[#allocation2 + $0x1] sm:$0x8] %vm1767_vm10, %v1764_v7 }
0x1ba4   : > { %v1771_v30 = vshrl.u32 %v1769_v38, 16 }
0x1ba6   : > { %v1773_v51 = vrot.slane %v1771_v30, 1 }
0x1ba8   : > { %2451 = vmatmul.mubr.msk.bf16.vlgmr.msra.gmra.mxu1 %vm525_vm4, %v1773_v51 }
0x1ba9   : > { %1972 = vmatpush1.bf16.msra.mxu1 %v3505_v39  ;;  %1995 = vmatprep.mubr.bf16.mxu1 %v3056_v0 }
0x1baa   : > { %1973 = vmatprep.subr.bf16.mxu1 %v3508_v29 }
0x1bad   : > { %1974 = vmatpush1.bf16.msra.mxu1 %v3512_v58 }
0x1bae   : > { %1975 = vmatprep.subr.bf16.mxu1 %v3515_v48 }
0x1bb1   : > { %1976 = vmatpush1.bf16.msra.mxu1 %v3517_v60 }
0x1bb2   : > { %1977 = vmatprep.subr.bf16.mxu1 %v3521_v61 }
0x1bb5   : > { %1978 = vmatpush1.bf16.msra.mxu1 %v3523_v11 }
0x1c68   : > { %v1811_v52 = vpop.f32.mrf.mxu1 }
0x1c69   : > { %v1820_v12 = vrot.slane %v1811_v52, 4 }
0x1c6a   : > { %v1813_v55 = vpop.f32.mrf.mxu1 }
0x1c6b   : > { %v1821_v56 = vrot.slane %v1813_v55, 4  ;;  %v1824_v14 = vadd.f32 %v1820_v12, %v3574_v44 }
0x1c6c   : > { %v1815_v57 = vpop.f32.mrf.mxu1 }
0x1c6d   : > { %v1825_v47 = vadd.f32 %v1821_v56, %v3563_v36  ;;  %v2452_v15 = vmul.f32 -1.442695, %v1824_v14 }
0x1c6e   : > { %v1816_v59 = vpop.f32.mrf.mxu1 }
0x1c6f   : > { %2782 = vtanh.f32 %v1825_v47  ;;  %v2453_v23 = vmul.f32 -1.442695, %v1825_v47 }
0x1c70   : > { %2784 = vpow2.f32 %v2452_v15 }
0x1c7c   : > { %v2783_v10 = vpop.eup %2782 }
0x1c7d   : > { %1844 = vrot.lane.b32.xlu0 %v2783_v10, %s3785_s22  ;;  %v2785_v16 = vpop.eup %2784 }
0x1c7e   : > { %v1832_v20 = vadd.f32 1.0, %v2785_v16 }
0x1c80   : > { %2786 = vrcp.f32 %v1832_v20 }
0x1c8d   : > { %v2787_v22 = vpop.eup %2786 }
0x1c8e   : > { %v1842_v36 = vmul.f32 %v2787_v22, %v1840_v26 }
0x1cef   : > { %v1845_v24 = vpop.permute.xlu0 %1844 }
0x1cf0   : > { %v1847_v25 = vmul.f32 %v2787_v22, %v1845_v24 }
0x1cf2   : > { %1849 = vrot.lane.b32.xlu1 %v1847_v25, %s3785_s22 }
0x1d64   : > { %v1850_v53 = vpop.permute.xlu1 %1849 }
0x1d65   : > { %v1852_v54 = vadd.f32 %v1850_v53, %v1842_v36 }
0x1d67   : > { %2788 = vtanh.f32 %v1852_v54  ;;  %v1932_v45 = vrot.slane %v1852_v54, 7 }
0x1d68   : > { %2790 = vpow2.f32 %v2453_v23 }
0x1d74   : > { %v2789_v28 = vpop.eup %2788 }
0x1d75   : > { %1855 = vrot.lane.b32.xlu0 %v2789_v28, %s3785_s22  ;;  %v2791_v44 = vpop.eup %2790 }
0x1d76   : > { %v1833_v1 = vadd.f32 1.0, %v2791_v44 }
0x1d78   : > { %2792 = vrcp.f32 %v1833_v1 }
0x1d85   : > { %v2793_v33 = vpop.eup %2792 }
0x1de7   : > { %v1856_v34 = vpop.permute.xlu0 %1855 }
0x1de8   : > { %v1858_v63 = vmul.f32 %v2793_v33, %v1856_v34 }
0x1dea   : > { %1860 = vst.msk [vmem:[#allocation2] sm:$0x10] %vm1859_vm11, %v1858_v63  ;;  %v1863_v37 = vpack.c.bf16 %v1858_v63, %v1858_v63 }
0x1deb   : > { %1862 = vst.msk [vmem:[#allocation2 - $0x1] sm:$0x10] %vm1861_vm12, %v1858_v63 }
0x1dec   : > { %v1865_v8 = vrot.slane %v1863_v37, 2 }
0x1dee   : > { %2454 = vmatmul.mubr.msk.bf16.vlgmr.msra.gmra.mxu0 %vm525_vm4, %v1865_v8 }
0x1def   : > { %2064 = vmatpush1.bf16.msra.mxu0 %v3505_v39  ;;  %2087 = vmatprep.mubr.bf16.mxu0 %v3056_v0 }
0x1df0   : > { %2065 = vmatprep.subr.bf16.mxu0 %v3508_v29 }
0x1df3   : > { %2066 = vmatpush1.bf16.msra.mxu0 %v3512_v58 }
0x1df4   : > { %2067 = vmatprep.subr.bf16.mxu0 %v3515_v48 }
0x1df7   : > { %2068 = vmatpush1.bf16.msra.mxu0 %v3517_v60 }
0x1df8   : > { %2069 = vmatprep.subr.bf16.mxu0 %v3521_v61 }
0x1dfb   : > { %2070 = vmatpush1.bf16.msra.mxu0 %v3523_v11 }
0x1eae   : > { %v1903_v35 = vpop.f32.mrf.mxu0 }
0x1eaf   : > { %v1912_v29 = vrot.slane %v1903_v35, 3 }
0x1eb0   : > { %v1905_v19 = vpop.f32.mrf.mxu0 }
0x1eb1   : > { %v1913_v62 = vrot.slane %v1905_v19, 3  ;;  %v1916_v58 = vadd.f32 %v1912_v29, %v3603_v21 }
0x1eb2   : > { %v1907_v41 = vpop.f32.mrf.mxu0 }
0x1eb3   : > { %v1917_v39 = vadd.f32 %v1913_v62, %v3595_v9  ;;  %v2455_v48 = vmul.f32 -1.442695, %v1916_v58 }
0x1eb4   : > { %v1908_v13 = vpop.f32.mrf.mxu0 }
0x1eb5   : > { %2794 = vtanh.f32 %v1917_v39  ;;  %v2456_v5 = vmul.f32 -1.442695, %v1917_v39 }
0x1eb6   : > { %2796 = vpow2.f32 %v2455_v48 }
0x1ec2   : > { %v2795_v0 = vpop.eup %2794 }
0x1ec3   : > { %1936 = vrot.lane.b32.xlu1 %v2795_v0, %s3785_s22  ;;  %v2797_v60 = vpop.eup %2796 }
0x1ec4   : > { %v1924_v61 = vadd.f32 1.0, %v2797_v60  ;;  %v2634_v60 = vld [vmem:[#allocation13 + $0x18] sm:$0xff]  }
0x1ec6   : > { %2798 = vrcp.f32 %v1924_v61 }
0x1ed3   : > { %v2799_v11 = vpop.eup %2798 }
0x1ed4   : > { %v1934_v9 = vmul.f32 %v2799_v11, %v1932_v45  ;;  %v2636_v45 = vld [vmem:[#allocation13 + $0x8] sm:$0xff]  }
0x1f35   : > { %v1937_v43 = vpop.permute.xlu1 %1936 }
0x1f36   : > { %v1939_v2 = vmul.f32 %v2799_v11, %v1937_v43 }
0x1f38   : > { %1941 = vrot.lane.b32.xlu0 %v1939_v2, %s3785_s22 }
0x1faa   : > { %v1942_v46 = vpop.permute.xlu0 %1941 }
0x1fab   : > { %v1944_v49 = vadd.f32 %v1942_v46, %v1934_v9  ;;  %v2637_v9 = vld [vmem:[#allocation13] sm:$0xff]  }
0x1fad   : > { %2800 = vtanh.f32 %v1944_v49  ;;  %v2026_v22 = vrot.slane %v1944_v49, 7 }
0x1fae   : > { %2802 = vpow2.f32 %v2456_v5 }
0x1fba   : > { %v2801_v3 = vpop.eup %2800 }
0x1fbb   : > { %1947 = vrot.lane.b32.xlu1 %v2801_v3, %s3785_s22  ;;  %v2803_v21 = vpop.eup %2802 }
0x1fbc   : > { %v1925_v31 = vadd.f32 1.0, %v2803_v21 }
0x1fbe   : > { %2804 = vrcp.f32 %v1925_v31 }
0x1fcb   : > { %v2805_v42 = vpop.eup %2804 }
0x202d   : > { %v1948_v27 = vpop.permute.xlu1 %1947 }
0x202e   : > { %v1950_v17 = vmul.f32 %v2805_v42, %v1948_v27 }
0x2030   : > { %1952 = vst.msk [vmem:[#allocation2] sm:$0x20] %vm1951_vm13, %v1950_v17  ;;  %v1955_v18 = vpack.c.bf16 %v1950_v17, %v1950_v17 }
0x2031   : > { %1954 = vst.msk [vmem:[#allocation2 - $0x3] sm:$0x20] %vm1953_vm14, %v1950_v17 }
0x2032   : > { %v1957_v6 = vshrl.u32 %v1955_v18, 16  ;;  %v2463_v18 = vld [vmem:[%s3759_s7] ss:$0 sm:$0xff] }
0x2034   : > { %v1959_v7 = vrot.slane %v1957_v6, 2 }
0x2036   : > { %2457 = vmatmul.mubr.msk.bf16.vlgmr.msra.gmra.mxu1 %vm525_vm4, %v1959_v7 }
0x20f6   : > { %v1997_v38 = vpop.f32.mrf.mxu1 }
0x20f7   : > { %v2006_v47 = vrot.slane %v1997_v38, 2 }
0x20f8   : > { %v1999_v30 = vpop.f32.mrf.mxu1 }
0x20f9   : > { %v2007_v51 = vrot.slane %v1999_v30, 2  ;;  %v2010_v59 = vadd.f32 %v2006_v47, %v3630_v50 }
0x20fa   : > { %v2001_v52 = vpop.f32.mrf.mxu1 }
0x20fb   : > { %v2011_v55 = vadd.f32 %v2007_v51, %v3622_v4  ;;  %v2458_v10 = vmul.f32 -1.442695, %v2010_v59 }
0x20fc   : > { %v2002_v56 = vpop.f32.mrf.mxu1 }
0x20fd   : > { %2806 = vtanh.f32 %v2011_v55  ;;  %v2459_v36 = vmul.f32 -1.442695, %v2011_v55 }
0x20fe   : > { %2808 = vpow2.f32 %v2458_v10 }
0x210a   : > { %v2807_v57 = vpop.eup %2806 }
0x210b   : > { %2030 = vrot.lane.b32.xlu0 %v2807_v57, %s3785_s22  ;;  %v2809_v12 = vpop.eup %2808 }
0x210c   : > { %v2018_v14 = vadd.f32 1.0, %v2809_v12 }
0x210e   : > { %2810 = vrcp.f32 %v2018_v14 }
0x211b   : > { %v2811_v15 = vpop.eup %2810 }
0x211c   : > { %v2028_v4 = vmul.f32 %v2811_v15, %v2026_v22 }
0x217d   : > { %v2031_v16 = vpop.permute.xlu0 %2030 }
0x217e   : > { %v2033_v20 = vmul.f32 %v2811_v15, %v2031_v16 }
0x2180   : > { %2035 = vrot.lane.b32.xlu1 %v2033_v20, %s3785_s22 }
0x21f2   : > { %v2036_v24 = vpop.permute.xlu1 %2035 }
0x21f3   : > { %v2038_v25 = vadd.f32 %v2036_v24, %v2028_v4 }
0x21f5   : > { %2812 = vtanh.f32 %v2038_v25  ;;  %v2118_v61 = vrot.slane %v2038_v25, 7 }
0x21f6   : > { %2814 = vpow2.f32 %v2459_v36 }
0x2202   : > { %v2813_v26 = vpop.eup %2812 }
0x2203   : > { %2041 = vrot.lane.b32.xlu0 %v2813_v26, %s3785_s22  ;;  %v2815_v50 = vpop.eup %2814 }
0x2204   : > { %v2019_v53 = vadd.f32 1.0, %v2815_v50 }
0x2206   : > { %2816 = vrcp.f32 %v2019_v53 }
0x2213   : > { %v2817_v54 = vpop.eup %2816 }
0x2275   : > { %v2042_v28 = vpop.permute.xlu0 %2041 }
0x2276   : > { %v2044_v23 = vmul.f32 %v2817_v54, %v2042_v28 }
0x2278   : > { %2046 = vst.msk [vmem:[#allocation2] sm:$0x40] %vm2045_vm15, %v2044_v23  ;;  %v2049_v44 = vpack.c.bf16 %v2044_v23, %v2044_v23 }
0x2279   : > { %2048 = vst.msk [vmem:[#allocation2 - $0x5] sm:$0x40] %vm2047_vm0, %v2044_v23 }
0x227a   : > { %v2051_v1 = vrot.slane %v2049_v44, 3 }
0x227c   : > { %2460 = vmatmul.mubr.msk.bf16.vlgmr.msra.gmra.mxu0 %vm525_vm4, %v2051_v1 }
0x233c   : > { %v2089_v33 = vpop.f32.mrf.mxu0 }
0x233d   : > { %v2098_v62 = vrot.slane %v2089_v33, 1 }
0x233e   : > { %v2091_v34 = vpop.f32.mrf.mxu0 }
0x233f   : > { %v2099_v63 = vrot.slane %v2091_v34, 1  ;;  %v2102_v41 = vadd.f32 %v2098_v62, %v3657_v40  ;;  %v2635_v40 = vld [vmem:[#allocation13 + $0x10] sm:$0xff]  }
0x2340   : > { %v2093_v37 = vpop.f32.mrf.mxu0 }
0x2341   : > { %v2103_v8 = vadd.f32 %v2099_v63, %v3649_v32  ;;  %v2461_v39 = vmul.f32 -1.442695, %v2102_v41  ;;  %v3058_v32 = vmov 0.0  }
0x2342   : > { %v2094_v35 = vpop.f32.mrf.mxu0  ;;  %2486 = vmatprep.subr.bf16.mxu1 %v3058_v32  ;;  %2494 = vmatprep.mubr.msk.bf16.mxu1 %vm3059_vm1, %v3058_v32 }
0x2343   : > { %2818 = vtanh.f32 %v2103_v8  ;;  %2487 = vmatpush3.bf16.msra.mxu1 %v2634_v60  ;;  %v2462_v49 = vmul.f32 -1.442695, %v2103_v8 }
0x2344   : > { %2820 = vpow2.f32 %v2461_v39  ;;  %2488 = vmatprep.subr.bf16.mxu1 %v3058_v32 }
0x2347   : > { %2489 = vmatpush3.bf16.msra.mxu1 %v2635_v40 }
0x2348   : > { %2490 = vmatprep.subr.bf16.mxu1 %v3058_v32 }
0x234b   : > { %2491 = vmatpush3.bf16.msra.mxu1 %v2636_v45 }
0x234c   : > { %2492 = vmatprep.subr.bf16.mxu1 %v3058_v32 }
0x234f   : > { %2493 = vmatpush3.bf16.msra.mxu1 %v2637_v9 }
0x2350   : > { %v2819_v19 = vpop.eup %2818 }
0x2351   : > { %2122 = vrot.lane.b32.xlu1 %v2819_v19, %s3785_s22  ;;  %v2821_v13 = vpop.eup %2820 }
0x2352   : > { %v2110_v0 = vadd.f32 1.0, %v2821_v13 }
0x2354   : > { %2822 = vrcp.f32 %v2110_v0 }
0x2361   : > { %v2823_v29 = vpop.eup %2822 }
0x2362   : > { %v2120_v11 = vmul.f32 %v2823_v29, %v2118_v61 }
0x23c3   : > { %v2123_v58 = vpop.permute.xlu1 %2122 }
0x23c4   : > { %v2125_v48 = vmul.f32 %v2823_v29, %v2123_v58 }
0x23c6   : > { %2127 = vrot.lane.b32.xlu0 %v2125_v48, %s3785_s22 }
0x2438   : > { %v2128_v43 = vpop.permute.xlu0 %2127 }
0x2439   : > { %v2130_v2 = vadd.f32 %v2128_v43, %v2120_v11 }
0x243b   : > { %2824 = vtanh.f32 %v2130_v2 }
0x243c   : > { %2826 = vpow2.f32 %v2462_v49 }
0x2448   : > { %v2825_v46 = vpop.eup %2824 }
0x2449   : > { %2133 = vrot.lane.b32.xlu1 %v2825_v46, %s3785_s22  ;;  %v2827_v3 = vpop.eup %2826  ;;  %s332_s22 = sand.u32 1, %s3034_s9  }
0x244a   : > { %v2111_v5 = vadd.f32 1.0, %v2827_v3  ;;  %s2374_s27 = sshll.u32 %s332_s22, 3  ;;  %s2227_s12 = scalar_lea.sflag [#allocation7], %s332_s22 }
0x244b   : > { %s334_s21 = scalar_lea.vmem [#allocation14], %s2374_s27 }
0x244c   : > { %2828 = vrcp.f32 %v2111_v5  ;;  %s2240_s15 = sshll.u32 %s334_s21, 4  ;;  %s3713_s15 = int_to_ptr.vmem [resolvable:$true] %s2240_s15 }
0x244d   : > { %s2968_s20 = scalar_lea.vmem %s3713_s15, 128  ;;  %p2975_p8 = scmp.lt.s32.totalorder %s3713_s15, %s2973_s24 }
0x244e   : > { %p2969_p10 = scmp.ne.s32.totalorder %s3713_s15, %s2968_s20  ;;  %p2976_p7 = scmp.lt.s32.totalorder %s2974_s1, %s2968_s20 }
0x2450   : > { %p2970_p4 = pnand %p2969_p10, %p3147_p5  ;;  %p2977_p11 = por %p2976_p7, %p2975_p8 }
0x2452   : > { %p2971_p9 = pneg %p2970_p4 }
0x2454   : > { %p2978_p0 = pnand %p2977_p11, %p2971_p9 }
0x2459   : > { %v2829_v21 = vpop.eup %2828 }
0x24bb   : > { %v2134_v31 = vpop.permute.xlu1 %2133 }
0x24bc   : > { %v2136_v42 = vmul.f32 %v2829_v21, %v2134_v31 }
0x24be   : > { %2138 = vst.msk [vmem:[#allocation2] sm:$0x80] %vm2137_vm2, %v2136_v42 }
0x24bf   : > { %2140 = vst.msk [vmem:[#allocation2 - $0x7] sm:$0x80] %vm2139_vm3, %v2136_v42 }
0x24c6   : > { %v2141_v27 = vld [vmem:[#allocation2] sm:$0xff] }
0x24c7   : > { %v2142_v17 = vpack.c.bf16 %v2141_v27, %v2141_v27 }
0x24c9   : > { %2495 = vmatmul.mubr.msk.bf16.vlgmr.msra.gmra.mxu1 %vm525_vm4, %v2142_v17 }
0x2589   : > { %v2219_v6 = vpop.f32.mrf.mxu1 }
0x258a   : > { %v2220_v7 = vadd.f32 %v2463_v18, %v2219_v6 }
0x258b   : > { %v2496_v38 = vpop.f32.mrf.mxu1 }
0x258c   : > { %2225 = vst [vmem:[%s334_s21] sm:$0xff] %v2220_v7 }
0x258d   : > { %v2222_v30 = vpop.f32.mrf.mxu1 }
0x258e   : > { %2981 = shalt.err (!%p2978_p0)
}
0x258f   : > { %s2982_s19 = scalar_lea.hbm %s3711_s14, 128  ;;  %s2986_s27 = scalar_lea.hbm %s3760_s8, 512 }
0x2590   : > { %p2983_p13 = scmp.ne.s32.totalorder %s3711_s14, %s2982_s19  ;;  %p2987_p2 = scmp.lt.s32.totalorder %s3711_s14, %s3760_s8 }
0x2591   : > { %p2988_p12 = scmp.lt.s32.totalorder %s2986_s27, %s2982_s19 }
0x2592   : > { %p2984_p3 = pnand %p2983_p13, %p3147_p5 }
0x2593   : > { %p2989_p10 = por %p2988_p12, %p2987_p2 }
0x2594   : > { %p2985_p1 = pneg %p2984_p3 }
0x2596   : > { %p2990_p4 = pnand %p2989_p10, %p2985_p1 }
0x2598   : > { %2993 = shalt.err (!%p2990_p4)
}
0x2599   : > { %2518 = dma.vmem_to_hbm [thread:$0]  (%p3147_p5), %s3713_s15, 128, %s3711_s14, %s2227_s12   ;;  %v2497_v51 = vpop.f32.mrf.mxu1 }
0x259a PF: > { %p2550_p9 = scmp.ge.s32.totalorder %s3042_s11, 2  ;;  %s2252_s21 = sand.u32 1, %s3030_s30  }
0x259b   : > { %s2253_s26 = scalar_lea.sflag [#allocation7], %s2252_s21 }
0x259c   : > { %p2537_p8 = pnand %p2550_p9, %p3151_p6 }
0x259e   : > { %p2538_p7 = pneg %p2537_p8 }
0x25a0   : > { %3025 = dma.done.wait (%p2538_p7), %s2253_s26, 128  }
0x25a1   : > { %3027 = vsyncadd (%p2538_p7), %s2253_s26, 4294967168  ;;  %p25_p11 = scmp.ge.s32.totalorder %s3134_s13, 6   ;;  %s3786_s30 = smov %s3034_s9 }
0x25a2   : > { %s3787_s9 = smov %s3038_s10  ;;  %s3788_s10 = smov %s3145_s16 }
0x25a3   : > { %s3789_s11 = smov %s3134_s13  ;;  %27 = sbr.rel (!%p25_p11) target bundleno = 12 (0xc), region = 109 }
0x25a8   :  { %2258 = vsyncpa [#allocation6], 1 }
0x25a9   :  { %2260 = vsyncpa [#allocation6 + $0x1], 1 }
0x25aa   :  { %2261 = vsyncpa [#allocation9], 1 }
0x25ab   :  { %2262 = vsyncpa [#allocation12], 1 }
0x25ac   :  { %2263 = vsyncpa [#allocation7], 1 }
0x25ad   :  { %2265 = vsyncpa [#allocation7 + $0x1], 1 }

</bundles_post_ra>
